<compile_context>
chip_gen: v6e
topology: v6e:2x2x1
jax: 0.10.0
libtpu: 0.0.40
codegen_flags: <defaults>
</compile_context>

<pallas_src>
import functools

import numpy as np
import jax
import jax.numpy as jnp
from jax import lax
from jax.experimental import pallas as pl
from jax.experimental.pallas import tpu as pltpu


# ---------------------------------------------------------------------------
# Fused Pallas kernel (one grid step == Bt batch elements)
# ---------------------------------------------------------------------------

def _hard_sigmoid(z):
    return jnp.clip(z * (1.0 / 6.0) + 0.5, 0.0, 1.0)


def _act(z, activation):
    if activation == "relu":
        return jnp.maximum(z, 0.0)
    return z  # linear / passthrough


def _basic_unit_kernel(*refs, ch, K, H, W, Bt, use_se, activation):
    """Whole BasicUnit for Bt batch elements, channel-major (ch, H*W) tiles."""
    if use_se:
        (x_ref, mask_ref,
         w1_ref, s1_ref, b1_ref,
         dww_ref, dws_ref, dwb_ref,
         w2_ref, s2_ref, b2_ref,
         se1w_ref, se1s_ref, se1b_ref, se2w_ref,
         o_ref) = refs
    else:
        (x_ref, mask_ref,
         w1_ref, s1_ref, b1_ref,
         dww_ref, dws_ref, dwb_ref,
         w2_ref, s2_ref, b2_ref,
         o_ref) = refs

    HW = H * W
    p = K // 2
    center = p * K + p

    # ---- weights / folded-BN params / masks: loaded ONCE per grid step, reused
    #      across the Bt images of this step.
    w1 = w1_ref[...]                                     # (ch, ch)  bf16 (MXU operand)
    w2 = w2_ref[...]                                     # (ch, ch)  bf16 (MXU operand)
    s1, b1 = s1_ref[...], b1_ref[...]                    # (ch, 1)   f32
    s2, b2 = s2_ref[...], b2_ref[...]                    # (ch, 1)   f32
    dws, dwb = dws_ref[...], dwb_ref[...]                # (ch, 1)   f32
    wdw = dww_ref[...]                                   # (K*K*ch, 1) tap-major, f32
    masks = mask_ref[...]                                # (K*K, HW) f32 {0,1}, precomputed
    tap_w = [wdw[t * ch:(t + 1) * ch, :] for t in range(K * K)]   # (ch, 1) aligned slices
    tap_m = [masks[t:t + 1, :] for t in range(K * K)]             # (1, HW)
    if use_se:
        se1w = se1w_ref[...]                             # (ch, mid) f32
        se1s, se1b = se1s_ref[...], se1b_ref[...]        # (1, mid)  f32
        se2w = se2w_ref[...]                             # (ch, mid) f32

    # Static (fully unrolled) loop over the Bt images of this grid step: one basic
    # block, so the LLO scheduler overlaps image i's MXU matmuls with image i+-1's
    # VALU depthwise work.
    for b in range(Bt):
        x_b = x_ref.at[b]                                # (ch, 2*HW) ref view
        o_b = o_ref.at[b]                                # (C, HW)    ref view

        # ---- channel shuffle: the wrapper packed channel pair (2g, 2g+1) into
        #      lanes [0,HW)/[HW,2HW) of row g.  Passthrough half goes straight to
        #      the output (never held in vregs across the branch computation).
        o_b[0:ch, :] = x_b[:, 0:HW].astype(o_ref.dtype)
        xb = x_b[:, HW:2 * HW]                           # (ch, HW) bf16

        # ---- 1x1 conv + folded BN + activation (bf16 MXU inputs, f32 accumulate)
        y = jnp.dot(w1, xb, preferred_element_type=jnp.float32)
        y = _act(y * s1 + b1, activation)

        # ---- depthwise KxK conv + folded BN: neighbour (dy,dx) of flattened pixel
        #      q is lane q + dy*W + dx -> static circular roll (XLU slot); lanes
        #      outside the image are zeroed by the precomputed 0/1 mask row.
        acc = y * tap_w[center]                          # center tap initializes acc
        for ky in range(K):
            dy = ky - p
            for kx in range(K):
                dx = kx - p
                t = ky * K + kx
                if t == center:
                    continue
                delta = dy * W + dx
                shifted = pltpu.roll(y, shift=(-delta) % HW, axis=1)
                acc = acc + shifted * tap_m[t] * tap_w[t]
        y = acc * dws + dwb

        # ---- pointwise half of DWConv2d: 1x1 conv + folded BN + activation
        y = jnp.dot(w2, y.astype(jnp.bfloat16), preferred_element_type=jnp.float32)
        y = _act(y * s2 + b2, activation)

        # ---- SELayer(reduction=2), fully fused: GAP is a lane reduction; the tiny
        #      squeeze/excite 1x1 convs are VPU broadcast-MACs (kept in f32).
        if use_se:
            pooled = jnp.sum(y, axis=1, keepdims=True) * (1.0 / HW)       # (ch, 1)
            z = jnp.sum(se1w * pooled, axis=0, keepdims=True)             # (1, mid)
            z = jnp.maximum(z * se1s + se1b, 0.0)                         # BN + ReLU
            s = jnp.sum(se2w * z, axis=1, keepdims=True)                  # (ch, 1)
            y = y * _hard_sigmoid(s)

        # ---- second half of concat([x_proj, branch]) : lane-dense store
        o_b[ch:2 * ch, :] = y.astype(o_ref.dtype)


# ---------------------------------------------------------------------------
# Wrapper: only free reshapes + trace-time constant prep outside the kernel
# ---------------------------------------------------------------------------

def _make_dw_masks(H, W, K):
    """(K*K, H*W) 0/1 f32 validity masks for each depthwise tap, built at trace time."""
    HW = H * W
    p = K // 2
    rows = np.arange(HW) // W
    cols = np.arange(HW) % W
    m = np.zeros((K * K, HW), np.float32)
    for ky in range(K):
        for kx in range(K):
            dy, dx = ky - p, kx - p
            valid = ((rows + dy >= 0) & (rows + dy < H) &
                     (cols + dx >= 0) & (cols + dx < W))
            m[ky * K + kx] = valid.astype(np.float32)
    return jnp.asarray(m)


def basic_unit_forward(x_nchw, params, K, use_se, activation="relu", batch_tile=2):
    B, C, H, W = x_nchw.shape
    assert C % 2 == 0
    ch = C // 2
    HW = H * W
    # Alignment contract: spatial axis on lanes, channels on sublanes.  Violations
    # would silently lower to masked-store / unaligned paths, so fail loudly.
    assert HW % 128 == 0, "H*W must be a multiple of 128 (lane-dense stores)"
    assert ch % 8 == 0, "in_channels//2 must be a multiple of 8 (16 preferred for bf16)"

    Bt = batch_tile if (B % batch_tile == 0) else 1

    # Free reshape: row g of the packed input holds [channel 2g | channel 2g+1],
    # each flattened over H*W.  bf16 HBM I/O (cast is a no-op if x is already bf16).
    x_packed = x_nchw.astype(jnp.bfloat16).reshape(B, ch, 2 * HW)

    col = lambda v: v.reshape(-1, 1).astype(jnp.float32)
    row = lambda v: v.reshape(1, -1).astype(jnp.float32)
    dw_w_col = params["dw_w"].T.reshape(K * K * ch, 1).astype(jnp.float32)
    masks = _make_dw_masks(H, W, K)

    args = [
        x_packed, masks,
        params["pw1_w"].astype(jnp.bfloat16), col(params["pw1_scale"]), col(params["pw1_bias"]),
        dw_w_col, col(params["dw_scale"]), col(params["dw_bias"]),
        params["pw2_w"].astype(jnp.bfloat16), col(params["pw2_scale"]), col(params["pw2_bias"]),
    ]
    if use_se:
        args += [params["se1_w"].astype(jnp.float32), row(params["se1_scale"]),
                 row(params["se1_bias"]), params["se2_w"].astype(jnp.float32)]

    in_specs = [pl.BlockSpec((Bt, ch, 2 * HW), lambda g: (g, 0, 0))]
    in_specs += [pl.BlockSpec(a.shape, lambda g: (0, 0)) for a in args[1:]]

    kernel = functools.partial(_basic_unit_kernel, ch=ch, K=K, H=H, W=W, Bt=Bt,
                               use_se=use_se, activation=activation)

    out = pl.pallas_call(
        kernel,
        out_shape=jax.ShapeDtypeStruct((B, C, HW), jnp.bfloat16),
        grid=(B // Bt,),
        in_specs=in_specs,
        out_specs=pl.BlockSpec((Bt, C, HW), lambda g: (g, 0, 0)),
        compiler_params=pltpu.CompilerParams(
            dimension_semantics=("parallel",)),          # split batch steps across TCs
    )(*args)

    return out.reshape(B, C, H, W)                       # free reshape back to NCHW


# ---------------------------------------------------------------------------
# Parameter construction (deterministic, BN folded into scale/bias)
# ---------------------------------------------------------------------------

def make_params(key, ch, K, use_se):
    keys = jax.random.split(key, 21)

    def bn_fold(kg, kb, km, kv, n):
        gamma = jax.random.uniform(kg, (n,), minval=0.5, maxval=1.5)
        beta = jax.random.normal(kb, (n,)) * 0.1
        mean = jax.random.normal(km, (n,)) * 0.1
        var = jax.random.uniform(kv, (n,), minval=0.5, maxval=1.5)
        scale = gamma / jnp.sqrt(var + 1e-5)
        bias = beta - mean * scale
        return scale.astype(jnp.float32), bias.astype(jnp.float32)

    p = {}
    # 1x1 conv weights stored channel-major: w[out, in]
    p["pw1_w"] = (jax.random.normal(keys[0], (ch, ch)) * 0.1).astype(jnp.float32)
    p["pw1_scale"], p["pw1_bias"] = bn_fold(keys[1], keys[2], keys[3], keys[4], ch)
    # depthwise weights stored as (channel, tap) with tap = ky*K + kx
    p["dw_w"] = (jax.random.normal(keys[5], (ch, K * K)) * 0.1).astype(jnp.float32)
    p["dw_scale"], p["dw_bias"] = bn_fold(keys[6], keys[7], keys[8], keys[9], ch)
    p["pw2_w"] = (jax.random.normal(keys[10], (ch, ch)) * 0.1).astype(jnp.float32)
    p["pw2_scale"], p["pw2_bias"] = bn_fold(keys[11], keys[12], keys[13], keys[14], ch)
    if use_se:
        mid = ch // 2                                     # SELayer(reduction=2)
        # SE weights stored as (ch, mid): se1_w[c, m] = c->m, se2_w[c, m] = m->c
        p["se1_w"] = (jax.random.normal(keys[15], (ch, mid)) * 0.1).astype(jnp.float32)
        p["se1_scale"], p["se1_bias"] = bn_fold(keys[16], keys[17], keys[18], keys[19], mid)
        p["se2_w"] = (jax.random.normal(keys[20], (ch, mid)) * 0.1).astype(jnp.float32)
    return p


# ---------------------------------------------------------------------------
# Pure-JAX reference (same math, no Pallas) for validation.
# Uses the same bf16-rounded 1x1 weights the kernel feeds to the MXU so the
# comparison isolates kernel correctness rather than weight quantization.
# ---------------------------------------------------------------------------

def reference(x_nchw, params, K, use_se, activation="relu"):
    B, C, H, W = x_nchw.shape
    ch = C // 2
    x_proj = x_nchw[:, 0::2]
    xb = x_nchw[:, 1::2]                                  # (B, ch, H, W)

    def act(z):
        return jnp.maximum(z, 0.0) if activation == "relu" else z

    def bcast(v):
        return v[None, :, None, None]

    w1 = params["pw1_w"].astype(jnp.bfloat16).astype(jnp.float32)
    w2 = params["pw2_w"].astype(jnp.bfloat16).astype(jnp.float32)

    y = jnp.einsum("oi,bihw->bohw", w1, xb, precision=lax.Precision.HIGHEST)
    y = act(y * bcast(params["pw1_scale"]) + bcast(params["pw1_bias"]))

    p = K // 2
    ypad = jnp.pad(y, ((0, 0), (0, 0), (p, p), (p, p)))
    wdw = params["dw_w"].reshape(ch, K, K)
    acc = jnp.zeros_like(y)
    for ky in range(K):
        for kx in range(K):
            acc = acc + ypad[:, :, ky:ky + H, kx:kx + W] * wdw[None, :, ky, kx, None, None]
    y = acc * bcast(params["dw_scale"]) + bcast(params["dw_bias"])

    y = jnp.einsum("oi,bihw->bohw", w2, y, precision=lax.Precision.HIGHEST)
    y = act(y * bcast(params["pw2_scale"]) + bcast(params["pw2_bias"]))

    if use_se:
        pooled = jnp.mean(y, axis=(2, 3))                 # (B, ch)
        z = jnp.einsum("cm,bc->bm", params["se1_w"], pooled, precision=lax.Precision.HIGHEST)
        z = jnp.maximum(z * params["se1_scale"] + params["se1_bias"], 0.0)
        s = jnp.einsum("cm,bm->bc", params["se2_w"], z, precision=lax.Precision.HIGHEST)
        s = jnp.clip(s / 6.0 + 0.5, 0.0, 1.0)
        y = y * s[:, :, None, None]

    return jnp.concatenate([x_proj, y], axis=1)


# ---------------------------------------------------------------------------

if __name__ == "__main__":
    key = jax.random.PRNGKey(0)
    kx, kp = jax.random.split(key)

    B, C, H, W = 8, 32, 16, 16        # NCHW; Bt=2 -> grid of 4 steps (>=2 per v7x TC)
    K = 3                             # kernel_size in {3, 5, 7}
    use_se = True
    activation = "relu"

    # bf16 HBM-facing input (the kernel's I/O dtype); reference consumes the same values.
    x = jax.random.normal(kx, (B, C, H, W), dtype=jnp.float32).astype(jnp.bfloat16)
    params = make_params(kp, C // 2, K, use_se)

    out = basic_unit_forward(x, params, K, use_se, activation)
    out = jax.block_until_ready(out)

    ref = reference(x.astype(jnp.float32), params, K, use_se, activation)
    assert out.shape == (B, C, H, W), out.shape
    out_f32 = out.astype(jnp.float32)
    err = float(jnp.max(jnp.abs(out_f32 - ref)))
    # bf16 I/O + bf16 MXU inputs -> loosened tolerance vs the pure-f32 reference.
    assert jnp.allclose(out_f32, ref, atol=3e-2, rtol=3e-2), err

    print("KERNEL_OK")
</pallas_src>

<mosaic_0001>
module attributes {stable_mosaic.version = 11 : i64} {
  func.func @_basic_unit_kernel(%arg0: i32, %arg1: memref<2x16x512xbf16, #tpu.memory_space<vmem>>, %arg2: memref<9x256xf32, #tpu.memory_space<vmem>>, %arg3: memref<16x16xbf16, #tpu.memory_space<vmem>>, %arg4: memref<16x1xf32, #tpu.memory_space<vmem>>, %arg5: memref<16x1xf32, #tpu.memory_space<vmem>>, %arg6: memref<144x1xf32, #tpu.memory_space<vmem>>, %arg7: memref<16x1xf32, #tpu.memory_space<vmem>>, %arg8: memref<16x1xf32, #tpu.memory_space<vmem>>, %arg9: memref<16x16xbf16, #tpu.memory_space<vmem>>, %arg10: memref<16x1xf32, #tpu.memory_space<vmem>>, %arg11: memref<16x1xf32, #tpu.memory_space<vmem>>, %arg12: memref<16x8xf32, #tpu.memory_space<vmem>>, %arg13: memref<1x8xf32, #tpu.memory_space<vmem>>, %arg14: memref<1x8xf32, #tpu.memory_space<vmem>>, %arg15: memref<16x8xf32, #tpu.memory_space<vmem>>, %arg16: memref<2x32x256xbf16, #tpu.memory_space<vmem>>) attributes {dimension_semantics = [#tpu.dimension_semantics<parallel>], iteration_bounds = array<i64: 4>, scalar_prefetch = 0 : i64, scratch_operands = 0 : i64, tpu.core_type = #tpu.core_type<tc>, window_params = [{transform_indices = @transform_0, window_bounds = array<i64: 2, 16, 512>}, {pipeline_mode = #tpu.pipeline_mode<synchronous>, transform_indices = @transform_1, window_bounds = array<i64: 9, 256>}, {pipeline_mode = #tpu.pipeline_mode<synchronous>, transform_indices = @transform_2, window_bounds = array<i64: 16, 16>}, {pipeline_mode = #tpu.pipeline_mode<synchronous>, transform_indices = @transform_3, window_bounds = array<i64: 16, 1>}, {pipeline_mode = #tpu.pipeline_mode<synchronous>, transform_indices = @transform_4, window_bounds = array<i64: 16, 1>}, {pipeline_mode = #tpu.pipeline_mode<synchronous>, transform_indices = @transform_5, window_bounds = array<i64: 144, 1>}, {pipeline_mode = #tpu.pipeline_mode<synchronous>, transform_indices = @transform_6, window_bounds = array<i64: 16, 1>}, {pipeline_mode = #tpu.pipeline_mode<synchronous>, transform_indices = @transform_7, window_bounds = array<i64: 16, 1>}, {pipeline_mode = #tpu.pipeline_mode<synchronous>, transform_indices = @transform_8, window_bounds = array<i64: 16, 16>}, {pipeline_mode = #tpu.pipeline_mode<synchronous>, transform_indices = @transform_9, window_bounds = array<i64: 16, 1>}, {pipeline_mode = #tpu.pipeline_mode<synchronous>, transform_indices = @transform_10, window_bounds = array<i64: 16, 1>}, {pipeline_mode = #tpu.pipeline_mode<synchronous>, transform_indices = @transform_11, window_bounds = array<i64: 16, 8>}, {pipeline_mode = #tpu.pipeline_mode<synchronous>, transform_indices = @transform_12, window_bounds = array<i64: 1, 8>}, {pipeline_mode = #tpu.pipeline_mode<synchronous>, transform_indices = @transform_13, window_bounds = array<i64: 1, 8>}, {pipeline_mode = #tpu.pipeline_mode<synchronous>, transform_indices = @transform_14, window_bounds = array<i64: 16, 8>}, {transform_indices = @transform_15, window_bounds = array<i64: 2, 32, 256>}]} {
    %c0 = arith.constant 0 : index
    %c0_0 = arith.constant 0 : index
    %0 = vector.load %arg3[%c0, %c0_0] : memref<16x16xbf16, #tpu.memory_space<vmem>>, vector<16x16xbf16>
    %c0_1 = arith.constant 0 : index
    %c0_2 = arith.constant 0 : index
    %1 = vector.load %arg9[%c0_1, %c0_2] : memref<16x16xbf16, #tpu.memory_space<vmem>>, vector<16x16xbf16>
    %c0_3 = arith.constant 0 : index
    %c0_4 = arith.constant 0 : index
    %2 = vector.load %arg4[%c0_3, %c0_4] : memref<16x1xf32, #tpu.memory_space<vmem>>, vector<16x1xf32>
    %c0_5 = arith.constant 0 : index
    %c0_6 = arith.constant 0 : index
    %3 = vector.load %arg5[%c0_5, %c0_6] : memref<16x1xf32, #tpu.memory_space<vmem>>, vector<16x1xf32>
    %c0_7 = arith.constant 0 : index
    %c0_8 = arith.constant 0 : index
    %4 = vector.load %arg10[%c0_7, %c0_8] : memref<16x1xf32, #tpu.memory_space<vmem>>, vector<16x1xf32>
    %c0_9 = arith.constant 0 : index
    %c0_10 = arith.constant 0 : index
    %5 = vector.load %arg11[%c0_9, %c0_10] : memref<16x1xf32, #tpu.memory_space<vmem>>, vector<16x1xf32>
    %c0_11 = arith.constant 0 : index
    %c0_12 = arith.constant 0 : index
    %6 = vector.load %arg7[%c0_11, %c0_12] : memref<16x1xf32, #tpu.memory_space<vmem>>, vector<16x1xf32>
    %c0_13 = arith.constant 0 : index
    %c0_14 = arith.constant 0 : index
    %7 = vector.load %arg8[%c0_13, %c0_14] : memref<16x1xf32, #tpu.memory_space<vmem>>, vector<16x1xf32>
    %c0_15 = arith.constant 0 : index
    %c0_16 = arith.constant 0 : index
    %8 = vector.load %arg6[%c0_15, %c0_16] : memref<144x1xf32, #tpu.memory_space<vmem>>, vector<144x1xf32>
    %c0_17 = arith.constant 0 : index
    %c0_18 = arith.constant 0 : index
    %9 = vector.load %arg2[%c0_17, %c0_18] : memref<9x256xf32, #tpu.memory_space<vmem>>, vector<9x256xf32>
    %10 = vector.extract_strided_slice %8 {offsets = [0, 0], sizes = [16, 1], strides = [1, 1]} : vector<144x1xf32> to vector<16x1xf32>
    %11 = vector.extract_strided_slice %8 {offsets = [16, 0], sizes = [16, 1], strides = [1, 1]} : vector<144x1xf32> to vector<16x1xf32>
    %12 = vector.extract_strided_slice %8 {offsets = [32, 0], sizes = [16, 1], strides = [1, 1]} : vector<144x1xf32> to vector<16x1xf32>
    %13 = vector.extract_strided_slice %8 {offsets = [48, 0], sizes = [16, 1], strides = [1, 1]} : vector<144x1xf32> to vector<16x1xf32>
    %14 = vector.extract_strided_slice %8 {offsets = [64, 0], sizes = [16, 1], strides = [1, 1]} : vector<144x1xf32> to vector<16x1xf32>
    %15 = vector.extract_strided_slice %8 {offsets = [80, 0], sizes = [16, 1], strides = [1, 1]} : vector<144x1xf32> to vector<16x1xf32>
    %16 = vector.extract_strided_slice %8 {offsets = [96, 0], sizes = [16, 1], strides = [1, 1]} : vector<144x1xf32> to vector<16x1xf32>
    %17 = vector.extract_strided_slice %8 {offsets = [112, 0], sizes = [16, 1], strides = [1, 1]} : vector<144x1xf32> to vector<16x1xf32>
    %18 = vector.extract_strided_slice %8 {offsets = [128, 0], sizes = [16, 1], strides = [1, 1]} : vector<144x1xf32> to vector<16x1xf32>
    %19 = vector.extract_strided_slice %9 {offsets = [0, 0], sizes = [1, 256], strides = [1, 1]} : vector<9x256xf32> to vector<1x256xf32>
    %20 = vector.extract_strided_slice %9 {offsets = [1, 0], sizes = [1, 256], strides = [1, 1]} : vector<9x256xf32> to vector<1x256xf32>
    %21 = vector.extract_strided_slice %9 {offsets = [2, 0], sizes = [1, 256], strides = [1, 1]} : vector<9x256xf32> to vector<1x256xf32>
    %22 = vector.extract_strided_slice %9 {offsets = [3, 0], sizes = [1, 256], strides = [1, 1]} : vector<9x256xf32> to vector<1x256xf32>
    %23 = vector.extract_strided_slice %9 {offsets = [5, 0], sizes = [1, 256], strides = [1, 1]} : vector<9x256xf32> to vector<1x256xf32>
    %24 = vector.extract_strided_slice %9 {offsets = [6, 0], sizes = [1, 256], strides = [1, 1]} : vector<9x256xf32> to vector<1x256xf32>
    %25 = vector.extract_strided_slice %9 {offsets = [7, 0], sizes = [1, 256], strides = [1, 1]} : vector<9x256xf32> to vector<1x256xf32>
    %26 = vector.extract_strided_slice %9 {offsets = [8, 0], sizes = [1, 256], strides = [1, 1]} : vector<9x256xf32> to vector<1x256xf32>
    %c0_19 = arith.constant 0 : index
    %c0_20 = arith.constant 0 : index
    %27 = vector.load %arg12[%c0_19, %c0_20] : memref<16x8xf32, #tpu.memory_space<vmem>>, vector<16x8xf32>
    %c0_21 = arith.constant 0 : index
    %c0_22 = arith.constant 0 : index
    %28 = vector.load %arg13[%c0_21, %c0_22] : memref<1x8xf32, #tpu.memory_space<vmem>>, vector<1x8xf32>
    %c0_23 = arith.constant 0 : index
    %c0_24 = arith.constant 0 : index
    %29 = vector.load %arg14[%c0_23, %c0_24] : memref<1x8xf32, #tpu.memory_space<vmem>>, vector<1x8xf32>
    %c0_25 = arith.constant 0 : index
    %c0_26 = arith.constant 0 : index
    %30 = vector.load %arg15[%c0_25, %c0_26] : memref<16x8xf32, #tpu.memory_space<vmem>>, vector<16x8xf32>
    %c0_i32 = arith.constant 0 : i32
    %c0_i32_27 = arith.constant 0 : i32
    %c0_i32_28 = arith.constant 0 : i32
    %31 = tpu.memref_slice %arg1[%c0_i32, %c0_i32_27, %c0_i32_28] : memref<2x16x512xbf16, #tpu.memory_space<vmem>> -> memref<1x16x512xbf16, #tpu.memory_space<vmem>>
    %32 = tpu.memref_squeeze %31 : memref<1x16x512xbf16, #tpu.memory_space<vmem>> -> memref<16x512xbf16, #tpu.memory_space<vmem>>
    %c0_29 = arith.constant 0 : index
    %c0_30 = arith.constant 0 : index
    %33 = vector.load %32[%c0_29, %c0_30] : memref<16x512xbf16, #tpu.memory_space<vmem>>, vector<16x256xbf16>
    %c0_i32_31 = arith.constant 0 : i32
    %c0_i32_32 = arith.constant 0 : i32
    %c0_i32_33 = arith.constant 0 : i32
    %34 = tpu.memref_slice %arg16[%c0_i32_31, %c0_i32_32, %c0_i32_33] : memref<2x32x256xbf16, #tpu.memory_space<vmem>> -> memref<1x32x256xbf16, #tpu.memory_space<vmem>>
    %35 = tpu.memref_squeeze %34 : memref<1x32x256xbf16, #tpu.memory_space<vmem>> -> memref<32x256xbf16, #tpu.memory_space<vmem>>
    %c0_34 = arith.constant 0 : index
    %c0_35 = arith.constant 0 : index
    %36 = vector.load %35[%c0_34, %c0_35] : memref<32x256xbf16, #tpu.memory_space<vmem>>, vector<16x256xbf16>
    tpu.vector_store %35[%c0_34, %c0_35], %33 {strides = array<i32>} : memref<32x256xbf16, #tpu.memory_space<vmem>>, vector<16x256xbf16>,
    %c0_i32_36 = arith.constant 0 : i32
    %c0_i32_37 = arith.constant 0 : i32
    %c0_i32_38 = arith.constant 0 : i32
    %37 = tpu.memref_slice %arg1[%c0_i32_36, %c0_i32_37, %c0_i32_38] : memref<2x16x512xbf16, #tpu.memory_space<vmem>> -> memref<1x16x512xbf16, #tpu.memory_space<vmem>>
    %38 = tpu.memref_squeeze %37 : memref<1x16x512xbf16, #tpu.memory_space<vmem>> -> memref<16x512xbf16, #tpu.memory_space<vmem>>
    %c0_39 = arith.constant 0 : index
    %c256 = arith.constant 256 : index
    %39 = vector.load %38[%c0_39, %c256] : memref<16x512xbf16, #tpu.memory_space<vmem>>, vector<16x256xbf16>
    %cst = arith.constant dense<0.000000e+00> : vector<16x256xf32>
    %40 = tpu.matmul %0, %39, %cst {dimension_numbers = #tpu.dot_dimension_numbers<[1], [0], [0], [1], [0, 0, 1, 1], [], []>} : vector<16x16xbf16>, vector<16x256xbf16>, vector<16x256xf32> -> vector<16x256xf32>
    %41 = vector.broadcast %2 : vector<16x1xf32> to vector<16x256xf32>
    %42 = arith.mulf %40, %41 : vector<16x256xf32>
    %43 = vector.broadcast %3 : vector<16x1xf32> to vector<16x256xf32>
    %44 = arith.addf %42, %43 : vector<16x256xf32>
    %cst_40 = arith.constant 0.000000e+00 : f32
    %45 = vector.broadcast %cst_40 : f32 to vector<16x256xf32>
    %46 = arith.maximumf %44, %45 : vector<16x256xf32>
    %47 = vector.broadcast %14 : vector<16x1xf32> to vector<16x256xf32>
    %48 = arith.mulf %46, %47 : vector<16x256xf32>
    %c17_i32 = arith.constant 17 : i32
    %49 = tpu.dynamic_rotate %46 by %c17_i32 dim 1 : vector<16x256xf32>, i32 -> vector<16x256xf32>
    %50 = vector.broadcast %19 : vector<1x256xf32> to vector<16x256xf32>
    %51 = arith.mulf %49, %50 : vector<16x256xf32>
    %52 = vector.broadcast %10 : vector<16x1xf32> to vector<16x256xf32>
    %53 = arith.mulf %51, %52 : vector<16x256xf32>
    %54 = arith.addf %48, %53 : vector<16x256xf32>
    %c16_i32 = arith.constant 16 : i32
    %55 = tpu.dynamic_rotate %46 by %c16_i32 dim 1 : vector<16x256xf32>, i32 -> vector<16x256xf32>
    %56 = vector.broadcast %20 : vector<1x256xf32> to vector<16x256xf32>
    %57 = arith.mulf %55, %56 : vector<16x256xf32>
    %58 = vector.broadcast %11 : vector<16x1xf32> to vector<16x256xf32>
    %59 = arith.mulf %57, %58 : vector<16x256xf32>
    %60 = arith.addf %54, %59 : vector<16x256xf32>
    %c15_i32 = arith.constant 15 : i32
    %61 = tpu.dynamic_rotate %46 by %c15_i32 dim 1 : vector<16x256xf32>, i32 -> vector<16x256xf32>
    %62 = vector.broadcast %21 : vector<1x256xf32> to vector<16x256xf32>
    %63 = arith.mulf %61, %62 : vector<16x256xf32>
    %64 = vector.broadcast %12 : vector<16x1xf32> to vector<16x256xf32>
    %65 = arith.mulf %63, %64 : vector<16x256xf32>
    %66 = arith.addf %60, %65 : vector<16x256xf32>
    %c1_i32 = arith.constant 1 : i32
    %67 = tpu.dynamic_rotate %46 by %c1_i32 dim 1 : vector<16x256xf32>, i32 -> vector<16x256xf32>
    %68 = vector.broadcast %22 : vector<1x256xf32> to vector<16x256xf32>
    %69 = arith.mulf %67, %68 : vector<16x256xf32>
    %70 = vector.broadcast %13 : vector<16x1xf32> to vector<16x256xf32>
    %71 = arith.mulf %69, %70 : vector<16x256xf32>
    %72 = arith.addf %66, %71 : vector<16x256xf32>
    %c255_i32 = arith.constant 255 : i32
    %73 = tpu.dynamic_rotate %46 by %c255_i32 dim 1 : vector<16x256xf32>, i32 -> vector<16x256xf32>
    %74 = vector.broadcast %23 : vector<1x256xf32> to vector<16x256xf32>
    %75 = arith.mulf %73, %74 : vector<16x256xf32>
    %76 = vector.broadcast %15 : vector<16x1xf32> to vector<16x256xf32>
    %77 = arith.mulf %75, %76 : vector<16x256xf32>
    %78 = arith.addf %72, %77 : vector<16x256xf32>
    %c241_i32 = arith.constant 241 : i32
    %79 = tpu.dynamic_rotate %46 by %c241_i32 dim 1 : vector<16x256xf32>, i32 -> vector<16x256xf32>
    %80 = vector.broadcast %24 : vector<1x256xf32> to vector<16x256xf32>
    %81 = arith.mulf %79, %80 : vector<16x256xf32>
    %82 = vector.broadcast %16 : vector<16x1xf32> to vector<16x256xf32>
    %83 = arith.mulf %81, %82 : vector<16x256xf32>
    %84 = arith.addf %78, %83 : vector<16x256xf32>
    %c240_i32 = arith.constant 240 : i32
    %85 = tpu.dynamic_rotate %46 by %c240_i32 dim 1 : vector<16x256xf32>, i32 -> vector<16x256xf32>
    %86 = vector.broadcast %25 : vector<1x256xf32> to vector<16x256xf32>
    %87 = arith.mulf %85, %86 : vector<16x256xf32>
    %88 = vector.broadcast %17 : vector<16x1xf32> to vector<16x256xf32>
    %89 = arith.mulf %87, %88 : vector<16x256xf32>
    %90 = arith.addf %84, %89 : vector<16x256xf32>
    %c239_i32 = arith.constant 239 : i32
    %91 = tpu.dynamic_rotate %46 by %c239_i32 dim 1 : vector<16x256xf32>, i32 -> vector<16x256xf32>
    %92 = vector.broadcast %26 : vector<1x256xf32> to vector<16x256xf32>
    %93 = arith.mulf %91, %92 : vector<16x256xf32>
    %94 = vector.broadcast %18 : vector<16x1xf32> to vector<16x256xf32>
    %95 = arith.mulf %93, %94 : vector<16x256xf32>
    %96 = arith.addf %90, %95 : vector<16x256xf32>
    %97 = vector.broadcast %6 : vector<16x1xf32> to vector<16x256xf32>
    %98 = arith.mulf %96, %97 : vector<16x256xf32>
    %99 = vector.broadcast %7 : vector<16x1xf32> to vector<16x256xf32>
    %100 = arith.addf %98, %99 : vector<16x256xf32>
    %101 = arith.truncf %100 : vector<16x256xf32> to vector<16x256xbf16>
    %cst_41 = arith.constant dense<0.000000e+00> : vector<16x256xf32>
    %102 = tpu.matmul %1, %101, %cst_41 {dimension_numbers = #tpu.dot_dimension_numbers<[1], [0], [0], [1], [0, 0, 1, 1], [], []>} : vector<16x16xbf16>, vector<16x256xbf16>, vector<16x256xf32> -> vector<16x256xf32>
    %103 = vector.broadcast %4 : vector<16x1xf32> to vector<16x256xf32>
    %104 = arith.mulf %102, %103 : vector<16x256xf32>
    %105 = vector.broadcast %5 : vector<16x1xf32> to vector<16x256xf32>
    %106 = arith.addf %104, %105 : vector<16x256xf32>
    %cst_42 = arith.constant 0.000000e+00 : f32
    %107 = vector.broadcast %cst_42 : f32 to vector<16x256xf32>
    %108 = arith.maximumf %106, %107 : vector<16x256xf32>
    %cst_43 = arith.constant dense<0.000000e+00> : vector<16xf32>
    %109 = vector.multi_reduction <add>, %108, %cst_43 [1] : vector<16x256xf32> to vector<16xf32>
    %110 = vector.shape_cast %109 : vector<16xf32> to vector<16x1xf32>
    %cst_44 = arith.constant 3.906250e-03 : f32
    %111 = vector.broadcast %cst_44 : f32 to vector<16x1xf32>
    %112 = arith.mulf %110, %111 : vector<16x1xf32>
    %113 = vector.broadcast %112 : vector<16x1xf32> to vector<16x8xf32>
    %114 = arith.mulf %27, %113 : vector<16x8xf32>
    %cst_45 = arith.constant dense<0.000000e+00> : vector<8xf32>
    %115 = vector.multi_reduction <add>, %114, %cst_45 [0] : vector<16x8xf32> to vector<8xf32>
    %116 = vector.shape_cast %115 : vector<8xf32> to vector<1x8xf32>
    %117 = arith.mulf %116, %28 : vector<1x8xf32>
    %118 = arith.addf %117, %29 : vector<1x8xf32>
    %cst_46 = arith.constant 0.000000e+00 : f32
    %119 = vector.broadcast %cst_46 : f32 to vector<1x8xf32>
    %120 = arith.maximumf %118, %119 : vector<1x8xf32>
    %121 = vector.broadcast %120 : vector<1x8xf32> to vector<16x8xf32>
    %122 = arith.mulf %30, %121 : vector<16x8xf32>
    %cst_47 = arith.constant dense<0.000000e+00> : vector<16xf32>
    %123 = vector.multi_reduction <add>, %122, %cst_47 [1] : vector<16x8xf32> to vector<16xf32>
    %124 = vector.shape_cast %123 : vector<16xf32> to vector<16x1xf32>
    %cst_48 = arith.constant 0.166666672 : f32
    %125 = vector.broadcast %cst_48 : f32 to vector<16x1xf32>
    %126 = arith.mulf %124, %125 : vector<16x1xf32>
    %cst_49 = arith.constant 5.000000e-01 : f32
    %127 = vector.broadcast %cst_49 : f32 to vector<16x1xf32>
    %128 = arith.addf %126, %127 : vector<16x1xf32>
    %cst_50 = arith.constant 0.000000e+00 : f32
    %cst_51 = arith.constant 1.000000e+00 : f32
    %129 = vector.broadcast %cst_50 : f32 to vector<16x1xf32>
    %130 = arith.maximumf %129, %128 : vector<16x1xf32>
    %131 = vector.broadcast %cst_51 : f32 to vector<16x1xf32>
    %132 = arith.minimumf %131, %130 : vector<16x1xf32>
    %133 = vector.broadcast %132 : vector<16x1xf32> to vector<16x256xf32>
    %134 = arith.mulf %108, %133 : vector<16x256xf32>
    %135 = arith.truncf %134 : vector<16x256xf32> to vector<16x256xbf16>
    %c0_i32_52 = arith.constant 0 : i32
    %c0_i32_53 = arith.constant 0 : i32
    %c0_i32_54 = arith.constant 0 : i32
    %136 = tpu.memref_slice %arg16[%c0_i32_52, %c0_i32_53, %c0_i32_54] : memref<2x32x256xbf16, #tpu.memory_space<vmem>> -> memref<1x32x256xbf16, #tpu.memory_space<vmem>>
    %137 = tpu.memref_squeeze %136 : memref<1x32x256xbf16, #tpu.memory_space<vmem>> -> memref<32x256xbf16, #tpu.memory_space<vmem>>
    %c16 = arith.constant 16 : index
    %c0_55 = arith.constant 0 : index
    %138 = vector.load %137[%c16, %c0_55] : memref<32x256xbf16, #tpu.memory_space<vmem>>, vector<16x256xbf16>
    tpu.vector_store %137[%c16, %c0_55], %135 {strides = array<i32>} : memref<32x256xbf16, #tpu.memory_space<vmem>>, vector<16x256xbf16>,
    %c1_i32_56 = arith.constant 1 : i32
    %c0_i32_57 = arith.constant 0 : i32
    %c0_i32_58 = arith.constant 0 : i32
    %139 = tpu.memref_slice %arg1[%c1_i32_56, %c0_i32_57, %c0_i32_58] : memref<2x16x512xbf16, #tpu.memory_space<vmem>> -> memref<1x16x512xbf16, #tpu.memory_space<vmem>>
    %140 = tpu.memref_squeeze %139 : memref<1x16x512xbf16, #tpu.memory_space<vmem>> -> memref<16x512xbf16, #tpu.memory_space<vmem>>
    %c0_59 = arith.constant 0 : index
    %c0_60 = arith.constant 0 : index
    %141 = vector.load %140[%c0_59, %c0_60] : memref<16x512xbf16, #tpu.memory_space<vmem>>, vector<16x256xbf16>
    %c1_i32_61 = arith.constant 1 : i32
    %c0_i32_62 = arith.constant 0 : i32
    %c0_i32_63 = arith.constant 0 : i32
    %142 = tpu.memref_slice %arg16[%c1_i32_61, %c0_i32_62, %c0_i32_63] : memref<2x32x256xbf16, #tpu.memory_space<vmem>> -> memref<1x32x256xbf16, #tpu.memory_space<vmem>>
    %143 = tpu.memref_squeeze %142 : memref<1x32x256xbf16, #tpu.memory_space<vmem>> -> memref<32x256xbf16, #tpu.memory_space<vmem>>
    %c0_64 = arith.constant 0 : index
    %c0_65 = arith.constant 0 : index
    %144 = vector.load %143[%c0_64, %c0_65] : memref<32x256xbf16, #tpu.memory_space<vmem>>, vector<16x256xbf16>
    tpu.vector_store %143[%c0_64, %c0_65], %141 {strides = array<i32>} : memref<32x256xbf16, #tpu.memory_space<vmem>>, vector<16x256xbf16>,
    %c1_i32_66 = arith.constant 1 : i32
    %c0_i32_67 = arith.constant 0 : i32
    %c0_i32_68 = arith.constant 0 : i32
    %145 = tpu.memref_slice %arg1[%c1_i32_66, %c0_i32_67, %c0_i32_68] : memref<2x16x512xbf16, #tpu.memory_space<vmem>> -> memref<1x16x512xbf16, #tpu.memory_space<vmem>>
    %146 = tpu.memref_squeeze %145 : memref<1x16x512xbf16, #tpu.memory_space<vmem>> -> memref<16x512xbf16, #tpu.memory_space<vmem>>
    %c0_69 = arith.constant 0 : index
    %c256_70 = arith.constant 256 : index
    %147 = vector.load %146[%c0_69, %c256_70] : memref<16x512xbf16, #tpu.memory_space<vmem>>, vector<16x256xbf16>
    %cst_71 = arith.constant dense<0.000000e+00> : vector<16x256xf32>
    %148 = tpu.matmul %0, %147, %cst_71 {dimension_numbers = #tpu.dot_dimension_numbers<[1], [0], [0], [1], [0, 0, 1, 1], [], []>} : vector<16x16xbf16>, vector<16x256xbf16>, vector<16x256xf32> -> vector<16x256xf32>
    %149 = vector.broadcast %2 : vector<16x1xf32> to vector<16x256xf32>
    %150 = arith.mulf %148, %149 : vector<16x256xf32>
    %151 = vector.broadcast %3 : vector<16x1xf32> to vector<16x256xf32>
    %152 = arith.addf %150, %151 : vector<16x256xf32>
    %cst_72 = arith.constant 0.000000e+00 : f32
    %153 = vector.broadcast %cst_72 : f32 to vector<16x256xf32>
    %154 = arith.maximumf %152, %153 : vector<16x256xf32>
    %155 = vector.broadcast %14 : vector<16x1xf32> to vector<16x256xf32>
    %156 = arith.mulf %154, %155 : vector<16x256xf32>
    %c17_i32_73 = arith.constant 17 : i32
    %157 = tpu.dynamic_rotate %154 by %c17_i32_73 dim 1 : vector<16x256xf32>, i32 -> vector<16x256xf32>
    %158 = vector.broadcast %19 : vector<1x256xf32> to vector<16x256xf32>
    %159 = arith.mulf %157, %158 : vector<16x256xf32>
    %160 = vector.broadcast %10 : vector<16x1xf32> to vector<16x256xf32>
    %161 = arith.mulf %159, %160 : vector<16x256xf32>
    %162 = arith.addf %156, %161 : vector<16x256xf32>
    %c16_i32_74 = arith.constant 16 : i32
    %163 = tpu.dynamic_rotate %154 by %c16_i32_74 dim 1 : vector<16x256xf32>, i32 -> vector<16x256xf32>
    %164 = vector.broadcast %20 : vector<1x256xf32> to vector<16x256xf32>
    %165 = arith.mulf %163, %164 : vector<16x256xf32>
    %166 = vector.broadcast %11 : vector<16x1xf32> to vector<16x256xf32>
    %167 = arith.mulf %165, %166 : vector<16x256xf32>
    %168 = arith.addf %162, %167 : vector<16x256xf32>
    %c15_i32_75 = arith.constant 15 : i32
    %169 = tpu.dynamic_rotate %154 by %c15_i32_75 dim 1 : vector<16x256xf32>, i32 -> vector<16x256xf32>
    %170 = vector.broadcast %21 : vector<1x256xf32> to vector<16x256xf32>
    %171 = arith.mulf %169, %170 : vector<16x256xf32>
    %172 = vector.broadcast %12 : vector<16x1xf32> to vector<16x256xf32>
    %173 = arith.mulf %171, %172 : vector<16x256xf32>
    %174 = arith.addf %168, %173 : vector<16x256xf32>
    %c1_i32_76 = arith.constant 1 : i32
    %175 = tpu.dynamic_rotate %154 by %c1_i32_76 dim 1 : vector<16x256xf32>, i32 -> vector<16x256xf32>
    %176 = vector.broadcast %22 : vector<1x256xf32> to vector<16x256xf32>
    %177 = arith.mulf %175, %176 : vector<16x256xf32>
    %178 = vector.broadcast %13 : vector<16x1xf32> to vector<16x256xf32>
    %179 = arith.mulf %177, %178 : vector<16x256xf32>
    %180 = arith.addf %174, %179 : vector<16x256xf32>
    %c255_i32_77 = arith.constant 255 : i32
    %181 = tpu.dynamic_rotate %154 by %c255_i32_77 dim 1 : vector<16x256xf32>, i32 -> vector<16x256xf32>
    %182 = vector.broadcast %23 : vector<1x256xf32> to vector<16x256xf32>
    %183 = arith.mulf %181, %182 : vector<16x256xf32>
    %184 = vector.broadcast %15 : vector<16x1xf32> to vector<16x256xf32>
    %185 = arith.mulf %183, %184 : vector<16x256xf32>
    %186 = arith.addf %180, %185 : vector<16x256xf32>
    %c241_i32_78 = arith.constant 241 : i32
    %187 = tpu.dynamic_rotate %154 by %c241_i32_78 dim 1 : vector<16x256xf32>, i32 -> vector<16x256xf32>
    %188 = vector.broadcast %24 : vector<1x256xf32> to vector<16x256xf32>
    %189 = arith.mulf %187, %188 : vector<16x256xf32>
    %190 = vector.broadcast %16 : vector<16x1xf32> to vector<16x256xf32>
    %191 = arith.mulf %189, %190 : vector<16x256xf32>
    %192 = arith.addf %186, %191 : vector<16x256xf32>
    %c240_i32_79 = arith.constant 240 : i32
    %193 = tpu.dynamic_rotate %154 by %c240_i32_79 dim 1 : vector<16x256xf32>, i32 -> vector<16x256xf32>
    %194 = vector.broadcast %25 : vector<1x256xf32> to vector<16x256xf32>
    %195 = arith.mulf %193, %194 : vector<16x256xf32>
    %196 = vector.broadcast %17 : vector<16x1xf32> to vector<16x256xf32>
    %197 = arith.mulf %195, %196 : vector<16x256xf32>
    %198 = arith.addf %192, %197 : vector<16x256xf32>
    %c239_i32_80 = arith.constant 239 : i32
    %199 = tpu.dynamic_rotate %154 by %c239_i32_80 dim 1 : vector<16x256xf32>, i32 -> vector<16x256xf32>
    %200 = vector.broadcast %26 : vector<1x256xf32> to vector<16x256xf32>
    %201 = arith.mulf %199, %200 : vector<16x256xf32>
    %202 = vector.broadcast %18 : vector<16x1xf32> to vector<16x256xf32>
    %203 = arith.mulf %201, %202 : vector<16x256xf32>
    %204 = arith.addf %198, %203 : vector<16x256xf32>
    %205 = vector.broadcast %6 : vector<16x1xf32> to vector<16x256xf32>
    %206 = arith.mulf %204, %205 : vector<16x256xf32>
    %207 = vector.broadcast %7 : vector<16x1xf32> to vector<16x256xf32>
    %208 = arith.addf %206, %207 : vector<16x256xf32>
    %209 = arith.truncf %208 : vector<16x256xf32> to vector<16x256xbf16>
    %cst_81 = arith.constant dense<0.000000e+00> : vector<16x256xf32>
    %210 = tpu.matmul %1, %209, %cst_81 {dimension_numbers = #tpu.dot_dimension_numbers<[1], [0], [0], [1], [0, 0, 1, 1], [], []>} : vector<16x16xbf16>, vector<16x256xbf16>, vector<16x256xf32> -> vector<16x256xf32>
    %211 = vector.broadcast %4 : vector<16x1xf32> to vector<16x256xf32>
    %212 = arith.mulf %210, %211 : vector<16x256xf32>
    %213 = vector.broadcast %5 : vector<16x1xf32> to vector<16x256xf32>
    %214 = arith.addf %212, %213 : vector<16x256xf32>
    %cst_82 = arith.constant 0.000000e+00 : f32
    %215 = vector.broadcast %cst_82 : f32 to vector<16x256xf32>
    %216 = arith.maximumf %214, %215 : vector<16x256xf32>
    %cst_83 = arith.constant dense<0.000000e+00> : vector<16xf32>
    %217 = vector.multi_reduction <add>, %216, %cst_83 [1] : vector<16x256xf32> to vector<16xf32>
    %218 = vector.shape_cast %217 : vector<16xf32> to vector<16x1xf32>
    %cst_84 = arith.constant 3.906250e-03 : f32
    %219 = vector.broadcast %cst_84 : f32 to vector<16x1xf32>
    %220 = arith.mulf %218, %219 : vector<16x1xf32>
    %221 = vector.broadcast %220 : vector<16x1xf32> to vector<16x8xf32>
    %222 = arith.mulf %27, %221 : vector<16x8xf32>
    %cst_85 = arith.constant dense<0.000000e+00> : vector<8xf32>
    %223 = vector.multi_reduction <add>, %222, %cst_85 [0] : vector<16x8xf32> to vector<8xf32>
    %224 = vector.shape_cast %223 : vector<8xf32> to vector<1x8xf32>
    %225 = arith.mulf %224, %28 : vector<1x8xf32>
    %226 = arith.addf %225, %29 : vector<1x8xf32>
    %cst_86 = arith.constant 0.000000e+00 : f32
    %227 = vector.broadcast %cst_86 : f32 to vector<1x8xf32>
    %228 = arith.maximumf %226, %227 : vector<1x8xf32>
    %229 = vector.broadcast %228 : vector<1x8xf32> to vector<16x8xf32>
    %230 = arith.mulf %30, %229 : vector<16x8xf32>
    %cst_87 = arith.constant dense<0.000000e+00> : vector<16xf32>
    %231 = vector.multi_reduction <add>, %230, %cst_87 [1] : vector<16x8xf32> to vector<16xf32>
    %232 = vector.shape_cast %231 : vector<16xf32> to vector<16x1xf32>
    %cst_88 = arith.constant 0.166666672 : f32
    %233 = vector.broadcast %cst_88 : f32 to vector<16x1xf32>
    %234 = arith.mulf %232, %233 : vector<16x1xf32>
    %cst_89 = arith.constant 5.000000e-01 : f32
    %235 = vector.broadcast %cst_89 : f32 to vector<16x1xf32>
    %236 = arith.addf %234, %235 : vector<16x1xf32>
    %cst_90 = arith.constant 0.000000e+00 : f32
    %cst_91 = arith.constant 1.000000e+00 : f32
    %237 = vector.broadcast %cst_90 : f32 to vector<16x1xf32>
    %238 = arith.maximumf %237, %236 : vector<16x1xf32>
    %239 = vector.broadcast %cst_91 : f32 to vector<16x1xf32>
    %240 = arith.minimumf %239, %238 : vector<16x1xf32>
    %241 = vector.broadcast %240 : vector<16x1xf32> to vector<16x256xf32>
    %242 = arith.mulf %216, %241 : vector<16x256xf32>
    %243 = arith.truncf %242 : vector<16x256xf32> to vector<16x256xbf16>
    %c1_i32_92 = arith.constant 1 : i32
    %c0_i32_93 = arith.constant 0 : i32
    %c0_i32_94 = arith.constant 0 : i32
    %244 = tpu.memref_slice %arg16[%c1_i32_92, %c0_i32_93, %c0_i32_94] : memref<2x32x256xbf16, #tpu.memory_space<vmem>> -> memref<1x32x256xbf16, #tpu.memory_space<vmem>>
    %245 = tpu.memref_squeeze %244 : memref<1x32x256xbf16, #tpu.memory_space<vmem>> -> memref<32x256xbf16, #tpu.memory_space<vmem>>
    %c16_95 = arith.constant 16 : index
    %c0_96 = arith.constant 0 : index
    %246 = vector.load %245[%c16_95, %c0_96] : memref<32x256xbf16, #tpu.memory_space<vmem>>, vector<16x256xbf16>
    tpu.vector_store %245[%c16_95, %c0_96], %243 {strides = array<i32>} : memref<32x256xbf16, #tpu.memory_space<vmem>>, vector<16x256xbf16>,
    return
  }
  func.func @transform_0(%arg0: i32) -> (i32, i32, i32) {
    %c0_i32 = arith.constant 0 : i32
    %c0_i32_0 = arith.constant 0 : i32
    %c0_i32_1 = arith.constant 0 : i32
    return %arg0, %c0_i32, %c0_i32_0 : i32, i32, i32
  }
  func.func @transform_1(%arg0: i32) -> (i32, i32) {
    %c0_i32 = arith.constant 0 : i32
    %c0_i32_0 = arith.constant 0 : i32
    %c0_i32_1 = arith.constant 0 : i32
    return %c0_i32, %c0_i32_0 : i32, i32
  }
  func.func @transform_2(%arg0: i32) -> (i32, i32) {
    %c0_i32 = arith.constant 0 : i32
    %c0_i32_0 = arith.constant 0 : i32
    %c0_i32_1 = arith.constant 0 : i32
    return %c0_i32, %c0_i32_0 : i32, i32
  }
  func.func @transform_3(%arg0: i32) -> (i32, i32) {
    %c0_i32 = arith.constant 0 : i32
    %c0_i32_0 = arith.constant 0 : i32
    %c0_i32_1 = arith.constant 0 : i32
    return %c0_i32, %c0_i32_0 : i32, i32
  }
  func.func @transform_4(%arg0: i32) -> (i32, i32) {
    %c0_i32 = arith.constant 0 : i32
    %c0_i32_0 = arith.constant 0 : i32
    %c0_i32_1 = arith.constant 0 : i32
    return %c0_i32, %c0_i32_0 : i32, i32
  }
  func.func @transform_5(%arg0: i32) -> (i32, i32) {
    %c0_i32 = arith.constant 0 : i32
    %c0_i32_0 = arith.constant 0 : i32
    %c0_i32_1 = arith.constant 0 : i32
    return %c0_i32, %c0_i32_0 : i32, i32
  }
  func.func @transform_6(%arg0: i32) -> (i32, i32) {
    %c0_i32 = arith.constant 0 : i32
    %c0_i32_0 = arith.constant 0 : i32
    %c0_i32_1 = arith.constant 0 : i32
    return %c0_i32, %c0_i32_0 : i32, i32
  }
  func.func @transform_7(%arg0: i32) -> (i32, i32) {
    %c0_i32 = arith.constant 0 : i32
    %c0_i32_0 = arith.constant 0 : i32
    %c0_i32_1 = arith.constant 0 : i32
    return %c0_i32, %c0_i32_0 : i32, i32
  }
  func.func @transform_8(%arg0: i32) -> (i32, i32) {
    %c0_i32 = arith.constant 0 : i32
    %c0_i32_0 = arith.constant 0 : i32
    %c0_i32_1 = arith.constant 0 : i32
    return %c0_i32, %c0_i32_0 : i32, i32
  }
  func.func @transform_9(%arg0: i32) -> (i32, i32) {
    %c0_i32 = arith.constant 0 : i32
    %c0_i32_0 = arith.constant 0 : i32
    %c0_i32_1 = arith.constant 0 : i32
    return %c0_i32, %c0_i32_0 : i32, i32
  }
  func.func @transform_10(%arg0: i32) -> (i32, i32) {
    %c0_i32 = arith.constant 0 : i32
    %c0_i32_0 = arith.constant 0 : i32
    %c0_i32_1 = arith.constant 0 : i32
    return %c0_i32, %c0_i32_0 : i32, i32
  }
  func.func @transform_11(%arg0: i32) -> (i32, i32) {
    %c0_i32 = arith.constant 0 : i32
    %c0_i32_0 = arith.constant 0 : i32
    %c0_i32_1 = arith.constant 0 : i32
    return %c0_i32, %c0_i32_0 : i32, i32
  }
  func.func @transform_12(%arg0: i32) -> (i32, i32) {
    %c0_i32 = arith.constant 0 : i32
    %c0_i32_0 = arith.constant 0 : i32
    %c0_i32_1 = arith.constant 0 : i32
    return %c0_i32, %c0_i32_0 : i32, i32
  }
  func.func @transform_13(%arg0: i32) -> (i32, i32) {
    %c0_i32 = arith.constant 0 : i32
    %c0_i32_0 = arith.constant 0 : i32
    %c0_i32_1 = arith.constant 0 : i32
    return %c0_i32, %c0_i32_0 : i32, i32
  }
  func.func @transform_14(%arg0: i32) -> (i32, i32) {
    %c0_i32 = arith.constant 0 : i32
    %c0_i32_0 = arith.constant 0 : i32
    %c0_i32_1 = arith.constant 0 : i32
    return %c0_i32, %c0_i32_0 : i32, i32
  }
  func.func @transform_15(%arg0: i32) -> (i32, i32, i32) {
    %c0_i32 = arith.constant 0 : i32
    %c0_i32_0 = arith.constant 0 : i32
    %c0_i32_1 = arith.constant 0 : i32
    return %arg0, %c0_i32, %c0_i32_0 : i32, i32, i32
  }
}

</mosaic_0001>

<bundles_post_ra>
// kernel: tpu_custom_call.1
= control target key start
LH: loop header
LB: loop body
LE: loop exit
PB: predicated region body
PF: predicated region fallthrough
CT: control target
= control target key end

     0   :  { %20 = vsyncpa [#allocation3], 0  ;;  %s3109_s0 = inlined_call_operand.vmem [shape: bf16[8,16,512], index: 0, kind: input, shape index: {}]   ;;  %s3110_s1 = inlined_call_operand.vmem [shape: f32[9,256], index: 1, kind: input, shape index: {}]   ;;  %s3111_s2 = inlined_call_operand.hbm [shape: bf16[16,16], index: 2, kind: input, shape index: {}]   ;;  %s3112_s3 = inlined_call_operand.vmem [shape: f32[16,1], index: 3, kind: input, shape index: {}]   ;;  %s3113_s4 = inlined_call_operand.vmem [shape: f32[16,1], index: 4, kind: input, shape index: {}]   ;;  %s3114_s5 = inlined_call_operand.vmem [shape: f32[144,1], index: 5, kind: input, shape index: {}]   ;;  %s3115_s6 = inlined_call_operand.vmem [shape: f32[16,1], index: 6, kind: input, shape index: {}]   ;;  %s3116_s7 = inlined_call_operand.vmem [shape: f32[16,1], index: 7, kind: input, shape index: {}]   ;;  %s3117_s8 = inlined_call_operand.hbm [shape: bf16[16,16], index: 8, kind: input, shape index: {}]   ;;  %s3118_s9 = inlined_call_operand.vmem [shape: f32[16,1], index: 9, kind: input, shape index: {}]   ;;  %s3119_s10 = inlined_call_operand.vmem [shape: f32[16,1], index: 10, kind: input, shape index: {}]   ;;  %s3120_s11 = inlined_call_operand.vmem [shape: f32[16,8], index: 11, kind: input, shape index: {}]   ;;  %s3121_s12 = inlined_call_operand.vmem [shape: f32[1,8], index: 12, kind: input, shape index: {}]   ;;  %s3122_s13 = inlined_call_operand.vmem [shape: f32[1,8], index: 13, kind: input, shape index: {}]   ;;  %s3123_s14 = inlined_call_operand.vmem [shape: f32[16,8], index: 14, kind: input, shape index: {}]   ;;  %s3124_s15 = inlined_call_operand.hbm [shape: bf16[8,32,256], index: 15, kind: output, shape index: {}]  }
   0x1   :  { %21 = vsyncpa [#allocation6], 0 }
   0x2   :  { %22 = vsyncpa [#allocation4], 0 }
   0x3   :  { %24 = vsyncpa [#allocation4 + $0x1], 0  ;;  %s2051_s18 = smov 0   ;;  %s2053_s19 = smov 0  }
   0x4   :  { %s2055_s20 = smov 0   ;;  %s2057_s21 = smov 0  }
   0x5 LB: > { %3168 = sst [smem:[#allocation11_spill]] %s1941_s18  ;;  %s2072_s22 = sadd.s32 4294967295, %s1953_s21   ;;  %s1953_s21 = sphi %s2057_s21, %s3231_s21   ;;  %s1949_s20 = sphi %s2055_s20, %s3233_s20   ;;  %s1945_s19 = sphi %s2053_s19, %s3235_s19   ;;  %s1941_s18 = sphi %s2051_s18, %s3234_s18  }
   0x6   : > { %3169 = sst [smem:[#allocation12_spill]] %s1949_s20  ;;  %s1701_s23 = sadd.s32 4294967294, %s1953_s21  }
   0x7   : > { %s2076_s24 = sadd.s32 1, %s1953_s21   ;;  %s357_s25 = sadd.s32 1, %s1949_s20 }
   0x8   : > { %3170 = sst [smem:[#allocation13_spill]] %s2076_s24  ;;  %s354_s26 = ssub.s32 %s1953_s21, %s2076_s24 }
   0x9   : > { %p367_p0 = scmp.ne.s32.totalorder %s1949_s20, %s1945_s19  ;;  %p355_p1 = scmp.eq.s32.totalorder %s354_s26, 0 }
   0xa   : > { %p368_p2 = scmp.eq.s32.totalorder %s2072_s22, 3  ;;  %p373_p3 = scmp.ne.s32.totalorder %s1945_s19, %s1941_s18 }
   0xb   : > { %p374_p4 = scmp.eq.s32.totalorder %s1701_s23, 3  ;;  %p1702_p7 = scmp.ge.s32.totalorder %s1953_s21, 1 }
   0xc   : > { %s2087_s27 = scalar_select %p355_p1, %s1949_s20, %s357_s25  }
   0xd   : > { %p2089_p5 = por %p368_p2, %p367_p0  ;;  %p2093_p6 = por %p374_p4, %p373_p3 }
   0xe   : > { %3171 = sst [smem:[#allocation14_spill]] %s2087_s27  ;;  %p381_p8 = scmp.lt.s32.totalorder %s1953_s21, 5 }
   0xf   : > { %s3173_s29 = scalar_select %p2093_p6, 1, 0 }
  0x10   : > { %p3129_p9 = scmp.eq.s32.totalorder %s2072_s22, 0  ;;  %p2100_p10 = pnand %p1702_p7, %p381_p8 }
  0x11   : > { %3174 = sst [smem:[#allocation15_spill]] %s3173_s29  ;;  %s1955_s16 = smov [#allocation2]  }
  0x12   : > { %s396_s17 = sshll.u32 %s1955_s16, 4  ;;  %p1760_p11 = pneg %p2100_p10  ;;  %s397_s17 = int_to_ptr.vmem [resolvable:$true] %s396_s17 }
  0x13   : > { %s1956_s25 = smov [#allocation5]   ;;  %s1844_s27 = scalar_lea.vmem %s397_s17, 128 }
  0x14   : > { %p2108_p12 = pnand %p3129_p9, %p1760_p11  ;;  %s424_s26 = sshll.u32 %s1956_s25, 4  ;;  %s425_s26 = int_to_ptr.vmem [resolvable:$true] %s424_s26 }
  0x15   : > { %p1845_p0 = scmp.ne.s32.totalorder %s397_s17, %s1844_s27  ;;  %p1852_p3 = scmp.lt.s32.totalorder %s397_s17, %s397_s17 }
  0x16   : > { %p1835_p13 = pneg %p2108_p12  ;;  %p1853_p4 = scmp.lt.s32.totalorder %s1844_s27, %s1844_s27 }
  0x18   : > { %p1847_p1 = pnand %p1845_p0, %p1835_p13  ;;  %p1854_p7 = por %p1853_p4, %p1852_p3 }
  0x1a   : > { %p1848_p2 = pneg %p1847_p1 }
  0x1c   : > { %p1855_p8 = pnand %p1854_p7, %p1848_p2 }
  0x1e   : > { %1858 = shalt.err (!%p1855_p8)
}
  0x1f   : > { %s1957_s16 = smov 64   ;;  %s1958_s20 = smov 4  }
  0x20   : > { %1763 = dma.hbm_to_vmem [thread:$0]  (!%p2108_p12), %s3111_s2, 128, %s397_s17, [#allocation3], %s1957_s16, %s1957_s16, %s1958_s20  }
  0x21   : > { %s1870_s29 = scalar_lea.vmem %s425_s26, 128  ;;  %p1878_p9 = scmp.lt.s32.totalorder %s425_s26, %s425_s26 }
  0x22   : > { %p1871_p11 = scmp.ne.s32.totalorder %s425_s26, %s1870_s29  ;;  %p1879_p6 = scmp.lt.s32.totalorder %s1870_s29, %s1870_s29 }
  0x24   : > { %p1873_p0 = pnand %p1871_p11, %p1835_p13  ;;  %p1880_p3 = por %p1879_p6, %p1878_p9 }
  0x26   : > { %p1874_p1 = pneg %p1873_p0 }
  0x28   : > { %p1881_p2 = pnand %p1880_p3, %p1874_p1 }
  0x2a   : > { %1884 = shalt.err (!%p1881_p2)
}
  0x2b   : > { %1766 = dma.hbm_to_vmem [thread:$0]  (!%p2108_p12), %s3117_s8, 128, %s425_s26, [#allocation6], %s1957_s16, %s1957_s16, %s1958_s20  }
  0x2c   : > { %468 = sbr.rel (%p2100_p10) target bundleno = 1066 (0x42a), region = 80 }
  0x31   : > { %p3177_p4 = scmp.eq.s32.totalorder %s2072_s22, 0 }
  0x33   : > { %1928 = dma.done.wait (%p3177_p4), [#allocation3], 128   ;;  %p3178_p13 = pmov %p3177_p4 }
  0x34   : > { %p3179_p7 = pmov %p3177_p4 }
  0x35   : > { %1930 = vsyncadd (%p3178_p13), [#allocation3], 4294967168 }
  0x36   : > { %1932 = dma.done.wait (%p3179_p7), [#allocation6], 128   ;;  %p3180_p6 = pmov %p3177_p4 }
  0x37   : > { %s1710_s24 = sshll.u32 %s2072_s22, 1  ;;  %v3131_v0 = vmov 0   ;;  %v1828_v3 = vld [vmem:[#allocation2] sm:$0xff]   ;;  %vm595_vm0 = vcmask 130048   ;;  %v535_v8 = vld [vmem:[%s3112_s3 + $0x8] sm:$0xff]  ;;  %v548_v14 = vld [vmem:[%s3114_s5 + $0x10] sm:$0xff] }
  0x38   : > { %1934 = vsyncadd (%p3180_p6), [#allocation6], 4294967168  ;;  %p522_p9 = scmp.lt.s32.totalorder %s1710_s24, 7  ;;  %631 = vmatprep.mubr.bf16.mxu0 %v3131_v0  ;;  %1823 = vset.pattern.permute.xlu0 %v3131_v0  ;;  %v534_v6 = vld [vmem:[%s3112_s3] sm:$0xff]  ;;  %v537_v9 = vld [vmem:[%s3113_s4 + $0x8] sm:$0xff]  ;;  %s1960_s26 = smov 17  }
  0x39   : > { %1824 = vset.pattern.permute.xlu1 %v3131_v0  ;;  %1104 = vmatprep.mubr.bf16.mxu1 %v3131_v0  ;;  %v536_v7 = vld [vmem:[%s3113_s4] sm:$0xff]  ;;  %v555_v11 = vld [vmem:[%s3114_s5 + $0x48] sm:$0xff]  ;;  %v549_v15 = vld [vmem:[%s3114_s5 + $0x18] sm:$0xff]  ;;  %s1961_s16 = smov 16   ;;  %s1962_s25 = smov 15   ;;  %vm1157_vm9 = vcmask 64512  }
  0x3a   : > { %s3237_s24 = smov (!%p522_p9, %s1710_s24), 7  ;;  %644 = vperm.xlu0 %1823, %v534_v6   ;;  %658 = vperm.xlu1 %1824, %v536_v7   ;;  %v554_v10 = vld [vmem:[%s3114_s5 + $0x40] sm:$0xff]  ;;  %v547_v13 = vld [vmem:[%s3114_s5 + $0x8] sm:$0xff]  ;;  %v552_v18 = vld [vmem:[%s3114_s5 + $0x30] sm:$0xff]  ;;  %s1963_s27 = smov 1  }
  0x3b   : > { %s1743_s18 = sshll.u32 %s3237_s24, 5  ;;  %v546_v12 = vld [vmem:[%s3114_s5] sm:$0xff]  ;;  %v551_v17 = vld [vmem:[%s3114_s5 + $0x28] sm:$0xff]  ;;  %v553_v19 = vld [vmem:[%s3114_s5 + $0x38] sm:$0xff]  ;;  %s1964_s24 = smov 127  }
  0x3c   : > { %s2148_s30 = scalar_lea.vmem %s3109_s0, %s1743_s18  ;;  %v550_v16 = vld [vmem:[%s3114_s5 + $0x20] sm:$0xff]  ;;  %v556_v20 = vld [vmem:[%s3114_s5 + $0x50] sm:$0xff]  ;;  %v557_v21 = vld [vmem:[%s3114_s5 + $0x58] sm:$0xff]  ;;  %s1965_s18 = smov 113  }
  0x3d   : > { %v1825_v1 = vld [vmem:[%s2148_s30 + $0xc] ss:$16 sps:$4 sm:$0xff]   ;;  %v1827_v2 = vld [vmem:[%s2148_s30 + $0x8] ss:$16 sps:$4 sm:$0xff]   ;;  %v558_v22 = vld [vmem:[%s3114_s5 + $0x60] sm:$0xff]  ;;  %s1966_s20 = smov 112  }
  0x3e   : > { %613 = vmatprep.subr.bf16.mxu0 %v1825_v1  ;;  %v1829_v4 = vld [vmem:[%s2148_s30 + $0x28] ss:$16 sps:$4 sm:$0xff]   ;;  %v1831_v5 = vld [vmem:[%s2148_s30 + $0x2c] ss:$16 sps:$4 sm:$0xff]   ;;  %649 = vperm.xlu0 %1823, %v535_v8   ;;  %v560_v24 = vld [vmem:[%s3114_s5 + $0x70] sm:$0xff]  ;;  %s1967_s29 = smov 111  }
  0x3f   : > { %614 = vmatpush1.bf16.msra.mxu0 %v1827_v2  ;;  %663 = vperm.xlu1 %1824, %v537_v9   ;;  %v559_v23 = vld [vmem:[%s3114_s5 + $0x68] sm:$0xff]  ;;  %v561_v25 = vld [vmem:[%s3114_s5 + $0x78] sm:$0xff]  ;;  %v562_v26 = vld [vmem:[%s3114_s5 + $0x80] sm:$0xff]  ;;  %s1749_s23 = sshll.u32 %s2072_s22, 10 }
  0x40   : > { %1240 = vmatprep.subr.bf16.mxu0 %v1831_v5  ;;  %v563_v27 = vld [vmem:[%s3114_s5 + $0x88] sm:$0xff]  ;;  %v542_v28 = vld [vmem:[%s3115_s6] sm:$0xff] }
  0x41   : > { %v543_v29 = vld [vmem:[%s3115_s6 + $0x8] sm:$0xff]  ;;  %v544_v30 = vld [vmem:[%s3116_s7] sm:$0xff] }
  0x42   : > { %1716 = vmatmul.mubr.msk.bf16.vlgmr.msra.gmra.mxu0 %vm595_vm0, %v1828_v3  ;;  %676 = vperm.xlu0 %1823, %v554_v10   ;;  %v545_v31 = vld [vmem:[%s3116_s7 + $0x8] sm:$0xff] }
  0x43   : > { %1241 = vmatpush1.bf16.msra.mxu0 %v1829_v4  ;;  %1258 = vmatprep.mubr.bf16.mxu0 %v3131_v0 }
  0x44   : > { %681 = vperm.xlu1 %1824, %v555_v11  }
  0x46   : > { %717 = vperm.xlu0 %1823, %v546_v12  }
  0x48   : > { %722 = vperm.xlu1 %1824, %v547_v13  }
  0x4a   : > { %1731 = vmatmul.mubr.msk.bf16.vlgmr.msra.gmra.mxu0 %vm595_vm0, %v1828_v3  ;;  %760 = vperm.xlu0 %1823, %v548_v14  }
  0x4c   : > { %765 = vperm.xlu1 %1824, %v549_v15  }
  0x4e   : > { %803 = vperm.xlu0 %1823, %v550_v16  }
  0x50   : > { %808 = vperm.xlu1 %1824, %v551_v17  }
  0x52   : > { %846 = vperm.xlu0 %1823, %v552_v18  }
  0x54   : > { %851 = vperm.xlu1 %1824, %v553_v19  }
  0x56   : > { %889 = vperm.xlu0 %1823, %v556_v20  }
  0x58   : > { %894 = vperm.xlu1 %1824, %v557_v21  }
  0x5a   : > { %932 = vperm.xlu0 %1823, %v558_v22  }
  0x5c   : > { %937 = vperm.xlu1 %1824, %v559_v23  }
  0x5e   : > { %975 = vperm.xlu0 %1823, %v560_v24  }
  0x60   : > { %980 = vperm.xlu1 %1824, %v561_v25  }
  0x62   : > { %1018 = vperm.xlu0 %1823, %v562_v26  }
  0x64   : > { %1023 = vperm.xlu1 %1824, %v563_v27  }
  0x66   : > { %1036 = vperm.xlu0 %1823, %v542_v28  }
  0x68   : > { %1041 = vperm.xlu1 %1824, %v543_v29  }
  0x6a   : > { %1050 = vperm.xlu0 %1823, %v544_v30  }
  0x6c   : > { %1055 = vperm.xlu1 %1824, %v545_v31  }
  0xb5   : > { %v2235_v32 = vpop.permute.xlu0 %644  ;;  %v2237_v33 = vpop.permute.xlu1 %658 }
  0xb9   : > { %v2241_v38 = vpop.permute.xlu0 %649 }
  0xba   : > { %v2246_v42 = vpop.permute.xlu1 %663 }
  0xbd   : > { %v2309_v53 = vpop.permute.xlu0 %676 }
  0xbe   : > { %3181 = vst [vmem:[#allocation16_spill] sm:$0xff] %v2309_v53 }
  0xbf   : > { %v2315_v55 = vpop.permute.xlu1 %681 }
  0xc0   : > { %3182 = vst [vmem:[#allocation17_spill] sm:$0xff] %v2315_v55 }
  0xc1   : > { %v2318_v58 = vpop.permute.xlu0 %717 }
  0xc2   : > { %3183 = vst [vmem:[#allocation18_spill] sm:$0xff] %v2318_v58 }
  0xc3   : > { %v2326_v61 = vpop.permute.xlu1 %722 }
  0xc4   : > { %3184 = vst [vmem:[#allocation19_spill] sm:$0xff] %v2326_v61 }
  0xc5   : > { %v2332_v62 = vpop.permute.xlu0 %760 }
  0xc6   : > { %3185 = vst [vmem:[#allocation20_spill] sm:$0xff] %v2332_v62 }
  0xc7   : > { %v2341_v2 = vpop.permute.xlu1 %765 }
  0xc9   : > { %v2345_v4 = vpop.permute.xlu0 %803 }
  0xca   : > { %3188 = vst [vmem:[#allocation23_spill] sm:$0xff] %v2345_v4 }
  0xcb   : > { %v2351_v5 = vpop.permute.xlu1 %808 }
  0xcd   : > { %v2357_v6 = vpop.permute.xlu0 %846 }
  0xcf   : > { %v2363_v7 = vpop.permute.xlu1 %851 }
  0xd1   : > { %v2365_v8 = vpop.permute.xlu0 %889 }
  0xd3   : > { %v2371_v9 = vpop.permute.xlu1 %894 }
  0xd5   : > { %v2377_v10 = vpop.permute.xlu0 %932 }
  0xd7   : > { %v2384_v13 = vpop.permute.xlu1 %937 }
  0xd9   : > { %v2388_v16 = vpop.permute.xlu0 %975 }
  0xdb   : > { %v2397_v19 = vpop.permute.xlu1 %980 }
  0xdc   : > { %3190 = vst [vmem:[#allocation25_spill] sm:$0xff] %v2397_v19 }
  0xdd   : > { %v2403_v20 = vpop.permute.xlu0 %1018 }
  0xdf   : > { %v2411_v22 = vpop.permute.xlu1 %1023 }
  0xe0   : > { %3192 = vst [vmem:[#allocation27_spill] sm:$0xff] %v2411_v22 }
  0xe1   : > { %v2413_v23 = vpop.permute.xlu0 %1036 }
  0xe2   : > { %3193 = vst [vmem:[#allocation28_spill] sm:$0xff] %v2413_v23 }
  0xe3   : > { %v2419_v24 = vpop.permute.xlu1 %1041 }
  0xe4   : > { %3194 = vst [vmem:[#allocation29_spill] sm:$0xff] %v2419_v24 }
  0xe5   : > { %v2425_v25 = vpop.permute.xlu0 %1050 }
  0xe6   : > { %3195 = vst [vmem:[#allocation30_spill] sm:$0xff] %v2425_v25 }
  0xe7   : > { %v2431_v26 = vpop.permute.xlu1 %1055 }
  0xe8   : > { %3196 = vst [vmem:[#allocation31_spill] sm:$0xff] %v2431_v26 }
 0x102   : > { %v633_v34 = vpop.f32.mrf.mxu0 }
 0x103   : > { %v652_v35 = vmul.f32 %v2235_v32, %v633_v34 }
 0x104   : > { %v635_v36 = vpop.f32.mrf.mxu0 }
 0x105   : > { %v666_v37 = vadd.f32 %v2237_v33, %v652_v35  ;;  %v653_v45 = vmul.f32 %v2235_v32, %v635_v36  ;;  %v540_v35 = vld [vmem:[%s3119_s10] sm:$0xff]  ;;  %v539_v36 = vld [vmem:[%s3118_s9 + $0x8] sm:$0xff] }
 0x106   : > { %v637_v39 = vpop.f32.mrf.mxu0 }
 0x107   : > { %v2243_v40 = vmax.f32 %v666_v37, 0.0  ;;  %v654_v41 = vmul.f32 %v2241_v38, %v637_v39  ;;  %v667_v47 = vadd.f32 %v2237_v33, %v653_v45  ;;  %v696_v39 = vlaneseq }
 0x108   : > { %v639_v46 = vpop.f32.mrf.mxu0 }
 0x109   : > { %v668_v43 = vadd.f32 %v2246_v42, %v654_v41  ;;  %688 = vrot.lane.b32.xlu0 %v2243_v40, %s1960_s26  ;;  %v655_v48 = vmul.f32 %v2241_v38, %v639_v46  ;;  %v2284_v49 = vmax.f32 %v667_v47, 0.0  ;;  %v541_v41 = vld [vmem:[%s3119_s10 + $0x8] sm:$0xff]  ;;  %v2479_v45 = vshrl.u32 %v696_v39, 7 }
 0x10a   : > { %v1260_v52 = vpop.f32.mrf.mxu0 }
 0x10b   : > { %v2251_v44 = vmax.f32 %v668_v43, 0.0  ;;  %v669_v50 = vadd.f32 %v2246_v42, %v655_v48  ;;  %v1269_v56 = vmul.f32 %v1260_v52, %v2235_v32  ;;  %v2485_v48 = vand.u32 127, %v696_v39  ;;  %v2493_v52 = vld [vmem:[%s3110_s1] sm:$0xff] }
 0x10c   : > { %v1262_v54 = vpop.f32.mrf.mxu0  ;;  %v877_v0 = vsub.s32 5, %v2479_v45 }
 0x10d   : > { %733 = vrot.lane.b32.xlu0 %v2243_v40, %s1961_s16  ;;  %690 = vrot.lane.b32.xlu1 %v2251_v44, %s1960_s26  ;;  %v2291_v51 = vmax.f32 %v669_v50, 0.0  ;;  %v1273_v59 = vadd.f32 %v1269_v56, %v2237_v33  ;;  %v1270_v11 = vmul.f32 %v1262_v54, %v2235_v32  ;;  %v538_v32 = vld [vmem:[%s3118_s9] sm:$0xff]  ;;  %v2488_v50 = vsub.s32 0, %v2479_v45  ;;  %v2498_v54 = vld [vmem:[%s3110_s1 + $0x8] sm:$0xff] }
 0x10e   : > { %v1264_v57 = vpop.f32.mrf.mxu0  ;;  %vm698_vm1 = vcmp.lt.s32.totalorder %v2485_v48, 17  ;;  %vm741_vm2 = vcmp.lt.s32.totalorder %v2485_v48, 16  ;;  %vm784_vm3 = vcmp.lt.s32.totalorder %v2485_v48, 15  ;;  %vm827_vm4 = vcmp.lt.s32.totalorder %v2485_v48, 1 }
 0x10f   : > { %v1271_v60 = vmul.f32 %v1264_v57, %v2241_v38  ;;  %v2334_v63 = vmax.f32 %v1273_v59, 0.0  ;;  %v1274_v14 = vadd.f32 %v1270_v11, %v2237_v33  ;;  %3197 = vst [vmem:[#allocation32_spill] sm:$0xff] %v2488_v50  ;;  %v748_v59 = vsub.s32 1, %v2479_v45 }
 0x110   : > { %v1266_v12 = vpop.f32.mrf.mxu0  ;;  %v684_v11 = vmul.f32 %v2309_v53, %v2243_v40  ;;  %vm870_vm5 = vcmp.lt.s32.totalorder %v2485_v48, 127  ;;  %v2582_v26 = vrot.slane %v2498_v54, %v877_v0  ;;  %vm913_vm6 = vcmp.lt.s32.totalorder %v2485_v48, 113 }
 0x111   : > { %776 = vrot.lane.b32.xlu0 %v2243_v40, %s1962_s25  ;;  %735 = vrot.lane.b32.xlu1 %v2251_v44, %s1961_s16  ;;  %3186 = vst [vmem:[#allocation21_spill] sm:$0xff] %v2334_v63  ;;  %v1275_v1 = vadd.f32 %v1271_v60, %v2246_v42  ;;  %v1272_v15 = vmul.f32 %v1266_v12, %v2241_v38  ;;  %v2394_v17 = vmax.f32 %v1274_v14, 0.0  ;;  %v791_v12 = vsub.s32 2, %v2479_v45 }
 0x112   : > { %v2508_v60 = vrot.slane %v2493_v52, %v2488_v50  ;;  %vm956_vm7 = vcmp.lt.s32.totalorder %v2485_v48, 112  ;;  %vm999_vm8 = vcmp.lt.s32.totalorder %v2485_v48, 111  ;;  %v3223_v48 = vld [vmem:[#allocation29_spill] sm:$0xff] }
 0x113   : > { %v2343_v3 = vmax.f32 %v1275_v1, 0.0  ;;  %3189 = vst [vmem:[#allocation24_spill] sm:$0xff] %v2394_v17  ;;  %v1276_v18 = vadd.f32 %v1272_v15, %v2246_v42  ;;  %v2512_v1 = vrot.slane %v2498_v54, %v2488_v50  ;;  %v685_v15 = vmul.f32 %v2309_v53, %v2284_v49 }
 0x114   : > { %3198 = vst [vmem:[#allocation33_spill] sm:$0xff] %v2508_v60  ;;  %v2546_v50 = vrot.slane %v2493_v52, %v791_v12 }
 0x115   : > { %819 = vrot.lane.b32.xlu0 %v2243_v40, %s1963_s27  ;;  %778 = vrot.lane.b32.xlu1 %v2251_v44, %s1962_s25  ;;  %3187 = vst [vmem:[#allocation22_spill] sm:$0xff] %v2343_v3  ;;  %v2405_v21 = vmax.f32 %v1276_v18, 0.0  ;;  %3199 = vst [vmem:[#allocation34_spill] sm:$0xff] %v2512_v1 }
 0x117   : > { %3191 = vst [vmem:[#allocation26_spill] sm:$0xff] %v2405_v21 }
 0x119   : > { %862 = vrot.lane.b32.xlu0 %v2243_v40, %s1964_s24  ;;  %821 = vrot.lane.b32.xlu1 %v2251_v44, %s1963_s27 }
 0x11d   : > { %905 = vrot.lane.b32.xlu0 %v2243_v40, %s1965_s18  ;;  %864 = vrot.lane.b32.xlu1 %v2251_v44, %s1964_s24 }
 0x121   : > { %948 = vrot.lane.b32.xlu0 %v2243_v40, %s1966_s20  ;;  %907 = vrot.lane.b32.xlu1 %v2251_v44, %s1965_s18 }
 0x125   : > { %991 = vrot.lane.b32.xlu0 %v2243_v40, %s1967_s29  ;;  %950 = vrot.lane.b32.xlu1 %v2251_v44, %s1966_s20 }
 0x129   : > { %692 = vrot.lane.b32.xlu0 %v2284_v49, %s1960_s26  ;;  %993 = vrot.lane.b32.xlu1 %v2251_v44, %s1967_s29 }
 0x12d   : > { %737 = vrot.lane.b32.xlu0 %v2284_v49, %s1961_s16  ;;  %694 = vrot.lane.b32.xlu1 %v2291_v51, %s1960_s26 }
 0x131   : > { %780 = vrot.lane.b32.xlu0 %v2284_v49, %s1962_s25  ;;  %739 = vrot.lane.b32.xlu1 %v2291_v51, %s1961_s16 }
 0x135   : > { %823 = vrot.lane.b32.xlu0 %v2284_v49, %s1963_s27  ;;  %782 = vrot.lane.b32.xlu1 %v2291_v51, %s1962_s25 }
 0x139   : > { %866 = vrot.lane.b32.xlu0 %v2284_v49, %s1964_s24  ;;  %825 = vrot.lane.b32.xlu1 %v2291_v51, %s1963_s27 }
 0x13d   : > { %909 = vrot.lane.b32.xlu0 %v2284_v49, %s1965_s18  ;;  %868 = vrot.lane.b32.xlu1 %v2291_v51, %s1964_s24 }
 0x141   : > { %952 = vrot.lane.b32.xlu0 %v2284_v49, %s1966_s20  ;;  %911 = vrot.lane.b32.xlu1 %v2291_v51, %s1965_s18 }
 0x145   : > { %995 = vrot.lane.b32.xlu0 %v2284_v49, %s1967_s29  ;;  %954 = vrot.lane.b32.xlu1 %v2291_v51, %s1966_s20  ;;  %v2536_v49 = vrot.slane %v2493_v52, %v748_v59 }
 0x149   : > { %1285 = vrot.lane.b32.xlu0 %v2334_v63, %s1960_s26  ;;  %997 = vrot.lane.b32.xlu1 %v2291_v51, %s1967_s29 }
 0x14d   : > { %1309 = vrot.lane.b32.xlu0 %v2334_v63, %s1961_s16  ;;  %1287 = vrot.lane.b32.xlu1 %v2343_v3, %s1960_s26 }
 0x151   : > { %1333 = vrot.lane.b32.xlu0 %v2334_v63, %s1962_s25  ;;  %1311 = vrot.lane.b32.xlu1 %v2343_v3, %s1961_s16 }
 0x155   : > { %1357 = vrot.lane.b32.xlu0 %v2334_v63, %s1963_s27  ;;  %1335 = vrot.lane.b32.xlu1 %v2343_v3, %s1962_s25 }
 0x159   : > { %1381 = vrot.lane.b32.xlu0 %v2334_v63, %s1964_s24  ;;  %1359 = vrot.lane.b32.xlu1 %v2343_v3, %s1963_s27 }
 0x15d   : > { %1405 = vrot.lane.b32.xlu0 %v2334_v63, %s1965_s18  ;;  %1383 = vrot.lane.b32.xlu1 %v2343_v3, %s1964_s24 }
 0x161   : > { %1429 = vrot.lane.b32.xlu0 %v2334_v63, %s1966_s20  ;;  %1407 = vrot.lane.b32.xlu1 %v2343_v3, %s1965_s18 }
 0x165   : > { %1453 = vrot.lane.b32.xlu0 %v2334_v63, %s1967_s29  ;;  %1431 = vrot.lane.b32.xlu1 %v2343_v3, %s1966_s20 }
 0x169   : > { %1289 = vrot.lane.b32.xlu0 %v2394_v17, %s1960_s26  ;;  %1455 = vrot.lane.b32.xlu1 %v2343_v3, %s1967_s29 }
 0x16d   : > { %1313 = vrot.lane.b32.xlu0 %v2394_v17, %s1961_s16  ;;  %1291 = vrot.lane.b32.xlu1 %v2405_v21, %s1960_s26 }
 0x171   : > { %1337 = vrot.lane.b32.xlu0 %v2394_v17, %s1962_s25  ;;  %1315 = vrot.lane.b32.xlu1 %v2405_v21, %s1961_s16 }
 0x175   : > { %1361 = vrot.lane.b32.xlu0 %v2394_v17, %s1963_s27  ;;  %1339 = vrot.lane.b32.xlu1 %v2405_v21, %s1962_s25 }
 0x179   : > { %1385 = vrot.lane.b32.xlu0 %v2394_v17, %s1964_s24  ;;  %1363 = vrot.lane.b32.xlu1 %v2405_v21, %s1963_s27  ;;  %s3061_s27 = scalar_lea.hbm %s3124_s15, %s1749_s23 }
 0x17b   : > { %v689_v27 = vpop.permute.xlu0 %688 }
 0x17d   : > { %1409 = vrot.lane.b32.xlu0 %v2394_v17, %s1965_s18  ;;  %1387 = vrot.lane.b32.xlu1 %v2405_v21, %s1964_s24  ;;  %s518_s24 = sand.u32 1, %s1945_s19  }
 0x17e   : > { %s3069_s22 = scalar_lea.sflag [#allocation4], %s518_s24 }
 0x17f   : > { %v2437_v28 = vpop.permute.xlu0 %733  ;;  %v2439_v29 = vpop.permute.xlu1 %690 }
 0x181   : > { %1433 = vrot.lane.b32.xlu0 %v2394_v17, %s1966_s20  ;;  %1411 = vrot.lane.b32.xlu1 %v2405_v21, %s1965_s18  ;;  %s1709_s18 = sshll.u32 %s518_s24, 6 }
 0x183   : > { %v2445_v30 = vpop.permute.xlu0 %776  ;;  %v2447_v31 = vpop.permute.xlu1 %735 }
 0x185   : > { %1457 = vrot.lane.b32.xlu0 %v2394_v17, %s1967_s29  ;;  %1435 = vrot.lane.b32.xlu1 %v2405_v21, %s1966_s20  ;;  %s3004_s20 = scalar_lea.vmem [#allocation7], %s1709_s18 }
 0x186   : > { %s1617_s26 = sshll.u32 %s3004_s20, 4  ;;  %s3063_s26 = int_to_ptr.vmem [resolvable:$true] %s1617_s26 }
 0x187   : > { %v2456_v33 = vpop.permute.xlu0 %819  ;;  %v2458_v34 = vpop.permute.xlu1 %778  ;;  %s1885_s18 = scalar_lea.vmem %s3063_s26, 1024 }
 0x188   : > { %p1886_p10 = scmp.ne.s32.totalorder %s3063_s26, %s1885_s18 }
 0x189   : > { %1117 = vperm.xlu0 %1823, %v538_v32   ;;  %1459 = vrot.lane.b32.xlu1 %v2405_v21, %s1967_s29  ;;  %v2523_v32 = vmul.f32 %v2315_v55, %v2251_v44  ;;  %s1968_s29 = smov [#allocation7]  }
 0x18a   : > { %p1887_p12 = pnand %p1886_p10, %p2089_p5  ;;  %s1889_s17 = sshll.u32 %s1968_s29, 4  ;;  %s1890_s17 = int_to_ptr.vmem [resolvable:$false] %s1889_s17 }
 0x18b   : > { %v2468_v37 = vpop.permute.xlu0 %862  ;;  %v2470_v38 = vpop.permute.xlu1 %821  ;;  %p1892_p11 = scmp.lt.s32.totalorder %s3063_s26, %s1890_s17 }
 0x18c   : > { %p1888_p8 = pneg %p1887_p12 }
 0x18d   : > { %1131 = vperm.xlu0 %1823, %v540_v35   ;;  %1122 = vperm.xlu1 %1824, %v539_v36   ;;  %v2527_v35 = vmul.f32 %v2315_v55, %v2291_v51  ;;  %v834_v36 = vsub.s32 3, %v2479_v45  ;;  %v2541_v51 = vrot.slane %v2498_v54, %v748_v59 }
 0x18f   : > { %v2475_v42 = vpop.permute.xlu0 %905  ;;  %v2477_v43 = vpop.permute.xlu1 %864  ;;  %v2556_v59 = vrot.slane %v2493_v52, %v834_v36  ;;  %v2573_v53 = vrot.slane %v2498_v54, %v834_v36 }
 0x191   : > { %1136 = vperm.xlu1 %1824, %v541_v41  }
 0x193   : > { %v2481_v46 = vpop.permute.xlu0 %948  ;;  %v2483_v47 = vpop.permute.xlu1 %907 }
 0x197   : > { %v2500_v56 = vpop.permute.xlu0 %991  ;;  %v2502_v57 = vpop.permute.xlu1 %950 }
 0x19b   : > { %v693_v14 = vpop.permute.xlu0 %692  ;;  %v2519_v18 = vpop.permute.xlu1 %993 }
 0x19c   : > { %v699_v40 = vsel %vm698_vm1, %v689_v27, %v693_v14  ;;  %v701_v39 = vsel %vm698_vm1, %v693_v14, %v689_v27  ;;  %v2549_v27 = vrot.slane %v2498_v54, %v791_v12  ;;  %v920_v14 = vsub.s32 6, %v2479_v45 }
 0x19d   : > { %v711_v44 = vmul.f32 %v2508_v60, %v701_v39  ;;  %v712_v41 = vmul.f32 %v2512_v1, %v699_v40 }
 0x19e   : > { %v2590_v25 = vrot.slane %v2498_v54, %v920_v14 }
 0x19f   : > { %v725_v21 = vmul.f32 %v2318_v58, %v711_v44  ;;  %v726_v39 = vmul.f32 %v2318_v58, %v712_v41  ;;  %v738_v40 = vpop.permute.xlu0 %737  ;;  %v695_v3 = vpop.permute.xlu1 %694  ;;  %v2576_v58 = vrot.slane %v2493_v52, %v877_v0 }
 0x1a0   : > { %v742_v55 = vsel %vm741_vm2, %v2437_v28, %v738_v40  ;;  %v744_v12 = vsel %vm741_vm2, %v738_v40, %v2437_v28  ;;  %v700_v44 = vsel %vm698_vm1, %v2439_v29, %v695_v3  ;;  %v702_v41 = vsel %vm698_vm1, %v695_v3, %v2439_v29 }
 0x1a1   : > { %v754_v17 = vmul.f32 %v2536_v49, %v744_v12  ;;  %v755_v63 = vmul.f32 %v2541_v51, %v742_v55  ;;  %v713_v28 = vmul.f32 %v2508_v60, %v702_v41  ;;  %v714_v40 = vmul.f32 %v2512_v1, %v700_v44 }
 0x1a2   : > { %v2585_v3 = vrot.slane %v2493_v52, %v920_v14  ;;  %v729_v44 = vadd.f32 %v725_v21, %v684_v11  ;;  %v730_v1 = vadd.f32 %v726_v39, %v685_v15 }
 0x1a3   : > { %v768_v55 = vmul.f32 %v2332_v62, %v754_v17  ;;  %v769_v29 = vmul.f32 %v2332_v62, %v755_v63  ;;  %v781_v36 = vpop.permute.xlu0 %780  ;;  %v740_v12 = vpop.permute.xlu1 %739  ;;  %v727_v17 = vmul.f32 %v2326_v61, %v713_v28  ;;  %v728_v63 = vmul.f32 %v2326_v61, %v714_v40 }
 0x1a4   : > { %v785_v0 = vsel %vm784_vm3, %v2445_v30, %v781_v36  ;;  %v787_v60 = vsel %vm784_vm3, %v781_v36, %v2445_v30  ;;  %v743_v15 = vsel %vm741_vm2, %v2447_v31, %v740_v12  ;;  %v745_v30 = vsel %vm741_vm2, %v740_v12, %v2447_v31 }
 0x1a5   : > { %v797_v62 = vmul.f32 %v2546_v50, %v787_v60  ;;  %v798_v14 = vmul.f32 %v2549_v27, %v785_v0  ;;  %v772_v21 = vadd.f32 %v768_v55, %v729_v44  ;;  %v773_v11 = vadd.f32 %v769_v29, %v730_v1 }
 0x1a6   : > { %v756_v60 = vmul.f32 %v2536_v49, %v745_v30  ;;  %v757_v40 = vmul.f32 %v2541_v51, %v743_v15  ;;  %v731_v29 = vadd.f32 %v727_v17, %v2523_v32  ;;  %v732_v12 = vadd.f32 %v728_v63, %v2527_v35 }
 0x1a7   : > { %v811_v39 = vmul.f32 %v2345_v4, %v797_v62  ;;  %v812_v28 = vmul.f32 %v2345_v4, %v798_v14  ;;  %v824_v36 = vpop.permute.xlu0 %823  ;;  %v783_v0 = vpop.permute.xlu1 %782 }
 0x1a8   : > { %v828_v1 = vsel %vm827_vm4, %v2456_v33, %v824_v36  ;;  %v830_v55 = vsel %vm827_vm4, %v824_v36, %v2456_v33  ;;  %v786_v62 = vsel %vm784_vm3, %v2458_v34, %v783_v0  ;;  %v788_v31 = vsel %vm784_vm3, %v783_v0, %v2458_v34 }
 0x1a9   : > { %v770_v44 = vmul.f32 %v2341_v2, %v756_v60  ;;  %v771_v14 = vmul.f32 %v2341_v2, %v757_v40  ;;  %v840_v15 = vmul.f32 %v2556_v59, %v830_v55  ;;  %v841_v33 = vmul.f32 %v2573_v53, %v828_v1 }
 0x1aa   : > { %v799_v30 = vmul.f32 %v2546_v50, %v788_v31  ;;  %v800_v36 = vmul.f32 %v2549_v27, %v786_v62  ;;  %v815_v41 = vadd.f32 %v811_v39, %v772_v21  ;;  %v816_v4 = vadd.f32 %v812_v28, %v773_v11 }
 0x1ab   : > { %v774_v61 = vadd.f32 %v770_v44, %v731_v29  ;;  %v867_v34 = vpop.permute.xlu0 %866  ;;  %v826_v0 = vpop.permute.xlu1 %825  ;;  %v775_v32 = vadd.f32 %v771_v14, %v732_v12  ;;  %v854_v35 = vmul.f32 %v2357_v6, %v840_v15  ;;  %v855_v17 = vmul.f32 %v2357_v6, %v841_v33 }
 0x1ac   : > { %v813_v63 = vmul.f32 %v2351_v5, %v799_v30  ;;  %v871_v60 = vsel %vm870_vm5, %v2468_v37, %v867_v34  ;;  %v873_v21 = vsel %vm870_vm5, %v867_v34, %v2468_v37  ;;  %v829_v11 = vsel %vm827_vm4, %v2470_v38, %v826_v0 }
 0x1ad   : > { %v831_v39 = vsel %vm827_vm4, %v826_v0, %v2470_v38  ;;  %v858_v28 = vadd.f32 %v854_v35, %v815_v41  ;;  %v859_v40 = vadd.f32 %v855_v17, %v816_v4  ;;  %v814_v1 = vmul.f32 %v2351_v5, %v800_v36 }
 0x1ae   : > { %v817_v55 = vadd.f32 %v813_v63, %v774_v61  ;;  %v883_v62 = vmul.f32 %v2576_v58, %v871_v60  ;;  %v884_v31 = vmul.f32 %v2582_v26, %v873_v21  ;;  %v842_v29 = vmul.f32 %v2556_v59, %v831_v39 }
 0x1af   : > { %v843_v37 = vmul.f32 %v2573_v53, %v829_v11  ;;  %v910_v12 = vpop.permute.xlu0 %909  ;;  %v869_v44 = vpop.permute.xlu1 %868  ;;  %v818_v35 = vadd.f32 %v814_v1, %v775_v32  ;;  %v3200_v17 = vsub.s32 7, %v2479_v45 }
 0x1b0   : > { %v914_v14 = vsel %vm913_vm6, %v2475_v42, %v910_v12  ;;  %v916_v4 = vsel %vm913_vm6, %v910_v12, %v2475_v42  ;;  %v872_v61 = vsel %vm870_vm5, %v2477_v43, %v869_v44  ;;  %v874_v38 = vsel %vm870_vm5, %v869_v44, %v2477_v43 }
 0x1b1   : > { %v897_v41 = vmul.f32 %v2365_v8, %v883_v62  ;;  %v898_v15 = vmul.f32 %v2365_v8, %v884_v31  ;;  %v856_v33 = vmul.f32 %v2363_v7, %v842_v29  ;;  %v857_v30 = vmul.f32 %v2363_v7, %v843_v37 }
 0x1b2   : > { %v926_v36 = vmul.f32 %v2585_v3, %v914_v14  ;;  %v927_v42 = vmul.f32 %v2590_v25, %v916_v4  ;;  %v885_v34 = vmul.f32 %v2576_v58, %v872_v61  ;;  %v886_v0 = vmul.f32 %v2582_v26, %v874_v38  ;;  %v2709_v14 = vld [vmem:[%s3110_s1 + $0x10] ss:$0 sm:$0xff] }
 0x1b3   : > { %v2678_v43 = vrot.slane %v2493_v52, %v3200_v17  ;;  %v3201_v63 = vmov %v3200_v17  ;;  %v953_v21 = vpop.permute.xlu0 %952  ;;  %v912_v11 = vpop.permute.xlu1 %911  ;;  %v901_v39 = vadd.f32 %v897_v41, %v858_v28  ;;  %v902_v62 = vadd.f32 %v898_v15, %v859_v40 }
 0x1b4   : > { %v2683_v60 = vrot.slane %v2498_v54, %v3201_v63  ;;  %v860_v31 = vadd.f32 %v856_v33, %v817_v55  ;;  %v940_v29 = vmul.f32 %v2377_v10, %v926_v36  ;;  %v957_v32 = vsel %vm956_vm7, %v2481_v46, %v953_v21 }
 0x1b5   : > { %v959_v45 = vsel %vm956_vm7, %v953_v21, %v2481_v46  ;;  %v915_v52 = vsel %vm913_vm6, %v2483_v47, %v912_v11  ;;  %v917_v54 = vsel %vm913_vm6, %v912_v11, %v2483_v47  ;;  %v861_v28 = vadd.f32 %v857_v30, %v818_v35  ;;  %v2714_v47 = vld [vmem:[%s3110_s1 + $0x18] ss:$0 sm:$0xff] }
 0x1b6   : > { %v941_v40 = vmul.f32 %v2377_v10, %v927_v42  ;;  %v899_v1 = vmul.f32 %v2371_v9, %v885_v34  ;;  %v900_v55 = vmul.f32 %v2371_v9, %v886_v0  ;;  %v969_v37 = vmul.f32 %v2678_v43, %v957_v32 }
 0x1b7   : > { %v970_v12 = vmul.f32 %v2683_v60, %v959_v45  ;;  %v928_v46 = vmul.f32 %v2585_v3, %v915_v52  ;;  %v929_v44 = vmul.f32 %v2590_v25, %v917_v54  ;;  %v996_v4 = vpop.permute.xlu0 %995  ;;  %v955_v61 = vpop.permute.xlu1 %954  ;;  %v944_v30 = vadd.f32 %v940_v29, %v901_v39 }
 0x1b8   : > { %v1000_v38 = vsel %vm999_vm8, %v2500_v56, %v996_v4  ;;  %v1002_v41 = vsel %vm999_vm8, %v996_v4, %v2500_v56  ;;  %v958_v15 = vsel %vm956_vm7, %v2502_v57, %v955_v61  ;;  %v960_v33 = vsel %vm956_vm7, %v955_v61, %v2502_v57 }
 0x1b9   : > { %v983_v36 = vmul.f32 %v2388_v16, %v969_v37  ;;  %v984_v42 = vmul.f32 %v2388_v16, %v970_v12  ;;  %v942_v34 = vmul.f32 %v2384_v13, %v928_v46  ;;  %v1012_v0 = vmul.f32 %v2709_v14, %v1000_v38 }
 0x1ba   : > { %v1013_v35 = vmul.f32 %v2714_v47, %v1002_v41  ;;  %v971_v56 = vmul.f32 %v2678_v43, %v958_v15  ;;  %v972_v17 = vmul.f32 %v2683_v60, %v960_v33  ;;  %v945_v63 = vadd.f32 %v941_v40, %v902_v62 }
 0x1bb   : > { %v903_v21 = vadd.f32 %v899_v1, %v860_v31  ;;  %v904_v11 = vadd.f32 %v900_v55, %v861_v28  ;;  %v943_v57 = vmul.f32 %v2384_v13, %v929_v44  ;;  %v1286_v39 = vpop.permute.xlu0 %1285  ;;  %v998_v29 = vpop.permute.xlu1 %997  ;;  %v987_v32 = vadd.f32 %v983_v36, %v944_v30 }
 0x1bc   : > { %v1026_v45 = vmul.f32 %v2403_v20, %v1012_v0  ;;  %v1027_v52 = vmul.f32 %v2403_v20, %v1013_v35  ;;  %v985_v54 = vmul.f32 %v2397_v19, %v971_v56  ;;  %v988_v37 = vadd.f32 %v984_v42, %v945_v63 }
 0x1bd   : > { %v986_v12 = vmul.f32 %v2397_v19, %v972_v17  ;;  %v1001_v62 = vsel %vm999_vm8, %v2519_v18, %v998_v29  ;;  %v1003_v31 = vsel %vm999_vm8, %v998_v29, %v2519_v18  ;;  %v946_v28 = vadd.f32 %v942_v34, %v903_v21  ;;  %v3202_v17 = vld [vmem:[#allocation30_spill] sm:$0xff]  ;;  %v3203_v21 = vld [vmem:[#allocation31_spill] sm:$0xff] }
 0x1be   : > { %v1030_v40 = vadd.f32 %v1026_v45, %v987_v32  ;;  %v1014_v1 = vmul.f32 %v2709_v14, %v1001_v62  ;;  %v947_v55 = vadd.f32 %v943_v57, %v904_v11  ;;  %v1015_v46 = vmul.f32 %v2714_v47, %v1003_v31  ;;  %v2768_v62 = vld [vmem:[#allocation5] sm:$0xff]  }
 0x1bf   : > { %v1310_v44 = vpop.permute.xlu0 %1309  ;;  %v1288_v4 = vpop.permute.xlu1 %1287  ;;  %v1031_v61 = vadd.f32 %v1027_v52, %v988_v37  ;;  %v989_v38 = vadd.f32 %v985_v54, %v946_v28  ;;  %3204 = vst [vmem:[#allocation35_spill] sm:$0xff] %v2768_v62 }
 0x1c0   : > { %v1028_v41 = vmul.f32 %v2411_v22, %v1014_v1  ;;  %v990_v15 = vadd.f32 %v986_v12, %v947_v55  ;;  %v1029_v33 = vmul.f32 %v2411_v22, %v1015_v46  ;;  %v1044_v36 = vmul.f32 %v2413_v23, %v1030_v40 }
 0x1c1   : > { %v1045_v0 = vmul.f32 %v2413_v23, %v1031_v61  ;;  %v3205_v40 = vmov 0  }
 0x1c2   : > { %v1032_v30 = vadd.f32 %v1028_v41, %v989_v38  ;;  %v1033_v34 = vadd.f32 %v1029_v33, %v990_v15  ;;  %v1058_v63 = vadd.f32 %v3202_v17, %v1044_v36 }
 0x1c3   : > { %v1334_v18 = vpop.permute.xlu0 %1333  ;;  %v2751_v42 = vpop.permute.xlu1 %1311  ;;  %v1059_v32 = vadd.f32 %v3202_v17, %v1045_v0 }
 0x1c4   : > { %v1046_v35 = vmul.f32 %v2419_v24, %v1032_v30  ;;  %v1047_v56 = vmul.f32 %v2419_v24, %v1033_v34  ;;  %v3207_v30 = vld [vmem:[#allocation33_spill] sm:$0xff]  ;;  %v3208_v34 = vld [vmem:[#allocation34_spill] sm:$0xff] }
 0x1c6   : > { %v1060_v11 = vadd.f32 %v3203_v21, %v1046_v35  ;;  %v1061_v45 = vadd.f32 %v3203_v21, %v1047_v56  ;;  %v3209_v35 = vld [vmem:[#allocation18_spill] sm:$0xff] }
 0x1c7   : > { %v2758_v57 = vpop.permute.xlu0 %1357  ;;  %v2760_v29 = vpop.permute.xlu1 %1335  ;;  %v3214_v21 = vld [vmem:[#allocation22_spill] sm:$0xff] }
 0x1c8   : > { %v1062_v52 = vpack.c.bf16 %v1060_v11, %v1058_v63  ;;  %v1063_v54 = vpack.c.bf16 %v1061_v45, %v1059_v32 }
 0x1ca   : > { %1086 = vmatprep.subr.bf16.mxu1 %v1063_v54 }
 0x1cb   : > { %v2764_v37 = vpop.permute.xlu0 %1381  ;;  %v2766_v12 = vpop.permute.xlu1 %1359  ;;  %1087 = vmatpush1.bf16.msra.mxu1 %v1062_v52 }
 0x1ce   : > { %1720 = vmatmul.mubr.msk.bf16.vlgmr.msra.gmra.mxu1 %vm595_vm0, %v2768_v62  ;;  %v3213_v62 = vld [vmem:[#allocation17_spill] sm:$0xff] }
 0x1cf   : > { %v2772_v31 = vpop.permute.xlu0 %1405  ;;  %v2774_v28 = vpop.permute.xlu1 %1383  ;;  %1519 = vmatprep.mubr.bf16.mxu1 %v3205_v40  ;;  %v3210_v40 = vld [vmem:[#allocation16_spill] sm:$0xff]  ;;  %v1283_v17 = vmul.f32 %v3214_v21, %v3213_v62 }
 0x1d3   : > { %v2777_v1 = vpop.permute.xlu0 %1429  ;;  %v2779_v55 = vpop.permute.xlu1 %1407 }
 0x1d7   : > { %v2781_v46 = vpop.permute.xlu0 %1453  ;;  %v2783_v61 = vpop.permute.xlu1 %1431 }
 0x1db   : > { %v1290_v38 = vpop.permute.xlu0 %1289  ;;  %v2785_v41 = vpop.permute.xlu1 %1455 }
 0x1dc   : > { %3206 = vst [vmem:[#allocation36_spill] sm:$0xff] %v2785_v41  ;;  %v1293_v15 = vsel %vm698_vm1, %v1286_v39, %v1290_v38  ;;  %v1295_v33 = vsel %vm698_vm1, %v1290_v38, %v1286_v39  ;;  %v3211_v38 = vld [vmem:[#allocation21_spill] sm:$0xff]  ;;  %v3217_v41 = vld [vmem:[#allocation19_spill] sm:$0xff] }
 0x1dd   : > { %v1297_v36 = vmul.f32 %v1295_v33, %v3207_v30  ;;  %v1298_v0 = vmul.f32 %v1293_v15, %v3208_v34  ;;  %v1281_v15 = vmul.f32 %v3211_v38, %v3210_v40  ;;  %v3212_v33 = vld [vmem:[#allocation24_spill] sm:$0xff] }
 0x1de   : > { %v3216_v38 = vld [vmem:[#allocation20_spill] sm:$0xff] }
 0x1df   : > { %v1301_v56 = vmul.f32 %v1297_v36, %v3209_v35  ;;  %v1302_v63 = vmul.f32 %v1298_v0, %v3209_v35  ;;  %v1314_v11 = vpop.permute.xlu0 %1313  ;;  %v1292_v32 = vpop.permute.xlu1 %1291  ;;  %v1282_v36 = vmul.f32 %v3212_v33, %v3210_v40 }
 0x1e0   : > { %v1317_v45 = vsel %vm741_vm2, %v1310_v44, %v1314_v11  ;;  %v1319_v52 = vsel %vm741_vm2, %v1314_v11, %v1310_v44  ;;  %v1294_v54 = vsel %vm698_vm1, %v1288_v4, %v1292_v32  ;;  %v1296_v39 = vsel %vm698_vm1, %v1292_v32, %v1288_v4  ;;  %v3215_v44 = vld [vmem:[#allocation26_spill] sm:$0xff] }
 0x1e1   : > { %v1321_v0 = vmul.f32 %v1319_v52, %v2536_v49  ;;  %v1322_v35 = vmul.f32 %v1317_v45, %v2541_v51  ;;  %v1284_v11 = vmul.f32 %v3215_v44, %v3213_v62  ;;  %v1299_v24 = vmul.f32 %v1296_v39, %v3207_v30 }
 0x1e2   : > { %v1300_v4 = vmul.f32 %v1294_v54, %v3208_v34  ;;  %v1305_v32 = vadd.f32 %v1301_v56, %v1281_v15  ;;  %v1306_v23 = vadd.f32 %v1302_v63, %v1282_v36  ;;  %v3218_v15 = vld [vmem:[#allocation23_spill] sm:$0xff] }
 0x1e3   : > { %v1325_v22 = vmul.f32 %v1321_v0, %v3216_v38  ;;  %v1326_v40 = vmul.f32 %v1322_v35, %v3216_v38  ;;  %v1338_v33 = vpop.permute.xlu0 %1337  ;;  %v1316_v52 = vpop.permute.xlu1 %1315  ;;  %v1303_v45 = vmul.f32 %v1299_v24, %v3217_v41 }
 0x1e4   : > { %v1304_v19 = vmul.f32 %v1300_v4, %v3217_v41  ;;  %v1341_v21 = vsel %vm784_vm3, %v1334_v18, %v1338_v33  ;;  %v1343_v62 = vsel %vm784_vm3, %v1338_v33, %v1334_v18  ;;  %v1318_v24 = vsel %vm741_vm2, %v2751_v42, %v1316_v52 }
 0x1e5   : > { %v1329_v30 = vadd.f32 %v1325_v22, %v1305_v32  ;;  %v1330_v34 = vadd.f32 %v1326_v40, %v1306_v23  ;;  %v1345_v56 = vmul.f32 %v1343_v62, %v2546_v50  ;;  %v1346_v63 = vmul.f32 %v1341_v21, %v2549_v27 }
 0x1e6   : > { %v1307_v54 = vadd.f32 %v1303_v45, %v1283_v17  ;;  %v1308_v39 = vadd.f32 %v1304_v19, %v1284_v11  ;;  %v1320_v41 = vsel %vm741_vm2, %v1316_v52, %v2751_v42  ;;  %v1324_v23 = vmul.f32 %v1318_v24, %v2541_v51 }
 0x1e7   : > { %v1349_v36 = vmul.f32 %v1345_v56, %v3218_v15  ;;  %v1350_v18 = vmul.f32 %v1346_v63, %v3218_v15  ;;  %v1323_v22 = vmul.f32 %v1320_v41, %v2536_v49  ;;  %v1362_v0 = vpop.permute.xlu0 %1361  ;;  %v1340_v35 = vpop.permute.xlu1 %1339 }
 0x1e8   : > { %v1365_v19 = vsel %vm827_vm4, %v2758_v57, %v1362_v0  ;;  %v1367_v17 = vsel %vm827_vm4, %v1362_v0, %v2758_v57  ;;  %v1342_v42 = vsel %vm784_vm3, %v2760_v29, %v1340_v35  ;;  %v1344_v49 = vsel %vm784_vm3, %v1340_v35, %v2760_v29 }
 0x1e9   : > { %v1353_v44 = vadd.f32 %v1349_v36, %v1329_v30  ;;  %v1354_v51 = vadd.f32 %v1350_v18, %v1330_v34  ;;  %v1327_v11 = vmul.f32 %v1323_v22, %v2341_v2  ;;  %v1328_v4 = vmul.f32 %v1324_v23, %v2341_v2 }
 0x1ea   : > { %v1369_v32 = vmul.f32 %v1367_v17, %v2556_v59  ;;  %v1370_v38 = vmul.f32 %v1365_v19, %v2573_v53  ;;  %v1347_v57 = vmul.f32 %v1344_v49, %v2546_v50  ;;  %v1348_v40 = vmul.f32 %v1342_v42, %v2549_v27 }
 0x1eb   : > { %v1331_v33 = vadd.f32 %v1327_v11, %v1307_v54  ;;  %v1332_v52 = vadd.f32 %v1328_v4, %v1308_v39  ;;  %v1386_v45 = vpop.permute.xlu0 %1385  ;;  %v1364_v21 = vpop.permute.xlu1 %1363 }
 0x1ec   : > { %v1373_v29 = vmul.f32 %v1369_v32, %v2357_v6  ;;  %v1374_v62 = vmul.f32 %v1370_v38, %v2357_v6  ;;  %v1351_v30 = vmul.f32 %v1347_v57, %v2351_v5  ;;  %v1352_v2 = vmul.f32 %v1348_v40, %v2351_v5 }
 0x1ed   : > { %v1389_v34 = vsel %vm870_vm5, %v2764_v37, %v1386_v45  ;;  %v1391_v50 = vsel %vm870_vm5, %v1386_v45, %v2764_v37  ;;  %v1366_v27 = vsel %vm827_vm4, %v2766_v12, %v1364_v21  ;;  %v1368_v6 = vsel %vm827_vm4, %v1364_v21, %v2766_v12 }
 0x1ee   : > { %v1377_v56 = vadd.f32 %v1373_v29, %v1353_v44  ;;  %v1378_v63 = vadd.f32 %v1374_v62, %v1354_v51  ;;  %v1355_v54 = vadd.f32 %v1351_v30, %v1331_v33  ;;  %v1356_v5 = vadd.f32 %v1352_v2, %v1332_v52 }
 0x1ef   : > { %v1393_v39 = vmul.f32 %v1389_v34, %v2576_v58  ;;  %v1394_v24 = vmul.f32 %v1391_v50, %v2582_v26  ;;  %v1371_v41 = vmul.f32 %v1368_v6, %v2556_v59  ;;  %v1372_v37 = vmul.f32 %v1366_v27, %v2573_v53  ;;  %v1410_v15 = vpop.permute.xlu0 %1409  ;;  %v1388_v36 = vpop.permute.xlu1 %1387 }
 0x1f0   : > { %v1413_v18 = vsel %vm913_vm6, %v2772_v31, %v1410_v15  ;;  %v1415_v12 = vsel %vm913_vm6, %v1410_v15, %v2772_v31  ;;  %v1390_v22 = vsel %vm870_vm5, %v2774_v28, %v1388_v36  ;;  %v1392_v59 = vsel %vm870_vm5, %v1388_v36, %v2774_v28  ;;  %v3219_v15 = vld [vmem:[#allocation25_spill] sm:$0xff] }
 0x1f1   : > { %v1397_v53 = vmul.f32 %v1393_v39, %v2365_v8  ;;  %v1398_v23 = vmul.f32 %v1394_v24, %v2365_v8  ;;  %v1375_v0 = vmul.f32 %v1371_v41, %v2363_v7  ;;  %v1376_v35 = vmul.f32 %v1372_v37, %v2363_v7 }
 0x1f2   : > { %v1417_v19 = vmul.f32 %v1413_v18, %v2585_v3  ;;  %v1418_v31 = vmul.f32 %v1415_v12, %v2590_v25  ;;  %v1395_v17 = vmul.f32 %v1390_v22, %v2576_v58  ;;  %v1396_v42 = vmul.f32 %v1392_v59, %v2582_v26  ;;  %v3220_v18 = vld [vmem:[#allocation36_spill] sm:$0xff] }
 0x1f3   : > { %v1401_v49 = vadd.f32 %v1397_v53, %v1377_v56  ;;  %v1402_v44 = vadd.f32 %v1398_v23, %v1378_v63  ;;  %v1379_v51 = vadd.f32 %v1375_v0, %v1355_v54  ;;  %v1380_v28 = vadd.f32 %v1376_v35, %v1356_v5  ;;  %v1434_v11 = vpop.permute.xlu0 %1433  ;;  %v1412_v4 = vpop.permute.xlu1 %1411  ;;  %v3221_v0 = vld [vmem:[#allocation27_spill] sm:$0xff] }
 0x1f4   : > { %v1421_v8 = vmul.f32 %v1417_v19, %v2377_v10  ;;  %v1422_v32 = vmul.f32 %v1418_v31, %v2377_v10  ;;  %v1399_v7 = vmul.f32 %v1395_v17, %v2371_v9  ;;  %v1400_v38 = vmul.f32 %v1396_v42, %v2371_v9  ;;  %v3222_v31 = vld [vmem:[#allocation28_spill] sm:$0xff] }
 0x1f5   : > { %v1437_v58 = vsel %vm956_vm7, %v2777_v1, %v1434_v11  ;;  %v1439_v26 = vsel %vm956_vm7, %v1434_v11, %v2777_v1  ;;  %v1414_v57 = vsel %vm913_vm6, %v2779_v55, %v1412_v4  ;;  %v1416_v10 = vsel %vm913_vm6, %v1412_v4, %v2779_v55  ;;  %v3224_v11 = vld [vmem:[#allocation30_spill] sm:$0xff] }
 0x1f6   : > { %v1425_v40 = vadd.f32 %v1421_v8, %v1401_v49  ;;  %v1426_v33 = vadd.f32 %v1422_v32, %v1402_v44  ;;  %v1403_v52 = vadd.f32 %v1399_v7, %v1379_v51  ;;  %v1404_v9 = vadd.f32 %v1400_v38, %v1380_v28  ;;  %v3225_v8 = vld [vmem:[#allocation31_spill] sm:$0xff] }
 0x1f7   : > { %v1441_v45 = vmul.f32 %v1437_v58, %v2678_v43  ;;  %v1442_v21 = vmul.f32 %v1439_v26, %v2683_v60  ;;  %v1419_v29 = vmul.f32 %v1414_v57, %v2585_v3  ;;  %v1420_v1 = vmul.f32 %v1416_v10, %v2590_v25  ;;  %v1458_v62 = vpop.permute.xlu0 %1457  ;;  %v1436_v30 = vpop.permute.xlu1 %1435  ;;  %v3226_v58 = vld [vmem:[#allocation35_spill] sm:$0xff] }
 0x1f8   : > { %v1461_v2 = vsel %vm999_vm8, %v2781_v46, %v1458_v62  ;;  %v1463_v55 = vsel %vm999_vm8, %v1458_v62, %v2781_v46  ;;  %v1438_v34 = vsel %vm956_vm7, %v2783_v61, %v1436_v30  ;;  %v1440_v3 = vsel %vm956_vm7, %v1436_v30, %v2783_v61 }
 0x1f9   : > { %v1445_v25 = vmul.f32 %v1441_v45, %v2388_v16  ;;  %v1446_v50 = vmul.f32 %v1442_v21, %v2388_v16  ;;  %v1423_v27 = vmul.f32 %v1419_v29, %v2384_v13  ;;  %v1424_v6 = vmul.f32 %v1420_v1, %v2384_v13 }
 0x1fa   : > { %v1465_v56 = vmul.f32 %v2709_v14, %v1461_v2  ;;  %v1466_v46 = vmul.f32 %v2714_v47, %v1463_v55  ;;  %v1443_v63 = vmul.f32 %v1438_v34, %v2678_v43  ;;  %v1444_v54 = vmul.f32 %v1440_v3, %v2683_v60 }
 0x1fb   : > { %v1449_v5 = vadd.f32 %v1445_v25, %v1425_v40  ;;  %v1450_v39 = vadd.f32 %v1446_v50, %v1426_v33  ;;  %v1427_v24 = vadd.f32 %v1423_v27, %v1403_v52  ;;  %v1428_v61 = vadd.f32 %v1424_v6, %v1404_v9  ;;  %v1460_v41 = vpop.permute.xlu1 %1459 }
 0x1fc   : > { %v1469_v37 = vmul.f32 %v1465_v56, %v2403_v20  ;;  %v1470_v16 = vmul.f32 %v1466_v46, %v2403_v20  ;;  %v1447_v36 = vmul.f32 %v1443_v63, %v3219_v15  ;;  %v1448_v13 = vmul.f32 %v1444_v54, %v3219_v15 }
 0x1fd   : > { %v1462_v12 = vsel %vm999_vm8, %v3220_v18, %v1460_v41  ;;  %v1464_v43 = vsel %vm999_vm8, %v1460_v41, %v3220_v18 }
 0x1fe   : > { %v1473_v60 = vadd.f32 %v1469_v37, %v1449_v5  ;;  %v1474_v22 = vadd.f32 %v1470_v16, %v1450_v39  ;;  %v1451_v59 = vadd.f32 %v1447_v36, %v1427_v24  ;;  %v1452_v53 = vadd.f32 %v1448_v13, %v1428_v61 }
 0x1ff   : > { %v1467_v23 = vmul.f32 %v2709_v14, %v1462_v12  ;;  %v1468_v20 = vmul.f32 %v2714_v47, %v1464_v43 }
 0x200   : > { %v1477_v17 = vmul.f32 %v1473_v60, %v3222_v31  ;;  %v1478_v44 = vmul.f32 %v1474_v22, %v3222_v31  ;;  %v569_v31 = vld [vmem:[%s3120_s11 + $0x8] sm:$0xff] }
 0x201   : > { %v1471_v35 = vmul.f32 %v1467_v23, %v3221_v0  ;;  %v1472_v19 = vmul.f32 %v1468_v20, %v3221_v0  ;;  %v1723_v23 = vld [vmem:[%s2148_s30 + $0x20] sm:$0xff]  ;;  %v1724_v20 = vld [vmem:[%s2148_s30 + $0x30] sm:$0xff] }
 0x202   : > { %v1482_v4 = vadd.f32 %v1478_v44, %v3224_v11  ;;  %v1481_v47 = vadd.f32 %v1477_v17, %v3224_v11  ;;  %1725 = vst [vmem:[%s3004_s20 + $0x20] sm:$0xff] %v1723_v23  ;;  %1726 = vst [vmem:[%s3004_s20 + $0x28] sm:$0xff] %v1724_v20 }
 0x203   : > { %v1475_v42 = vadd.f32 %v1471_v35, %v1451_v59  ;;  %v1476_v49 = vadd.f32 %v1472_v19, %v1452_v53  ;;  %v574_v59 = vld [vmem:[%s2148_s30] sm:$0xff]  ;;  %v575_v53 = vld [vmem:[%s2148_s30 + $0x10] sm:$0xff]  ;;  %s1891_s30 = scalar_lea.vmem %s1890_s17, 2048 }
 0x204   : > { %v1118_v26 = vpop.permute.xlu0 %1117  ;;  %576 = vst [vmem:[%s3004_s20] sm:$0xff] %v574_v59  ;;  %577 = vst [vmem:[%s3004_s20 + $0x8] sm:$0xff] %v575_v53  ;;  %v568_v19 = vld [vmem:[%s3120_s11] sm:$0xff]  ;;  %p1893_p0 = scmp.lt.s32.totalorder %s1891_s30, %s1885_s18 }
 0x205   : > { %v1479_v51 = vmul.f32 %v1475_v42, %v3223_v48  ;;  %v1480_v28 = vmul.f32 %v1476_v49, %v3223_v48 }
 0x206   : > { %p1894_p1 = por %p1893_p0, %p1892_p11 }
 0x207   : > { %v1484_v14 = vadd.f32 %v1480_v28, %v3225_v8  ;;  %v1483_v32 = vadd.f32 %v1479_v51, %v3225_v8 }
 0x208   : > { %v1123_v57 = vpop.permute.xlu1 %1122  ;;  %v1132_v33 = vpop.permute.xlu0 %1131  ;;  %p1895_p3 = pnand %p1894_p1, %p1888_p8 }
 0x209   : > { %v1486_v7 = vpack.c.bf16 %v1484_v14, %v1482_v4  ;;  %v1485_v38 = vpack.c.bf16 %v1483_v32, %v1481_v47  ;;  %v570_v32 = vld [vmem:[%s3121_s12] sm:$0x1] }
 0x20b   : > { %1501 = vmatprep.subr.bf16.mxu1 %v1486_v7 }
 0x20c   : > { %1502 = vmatpush1.bf16.msra.mxu1 %v1485_v38  ;;  %v1137_v62 = vpop.permute.xlu1 %1136  ;;  %v571_v38 = vld [vmem:[%s3122_s13] sm:$0x1] }
 0x20f   : > { %1732 = vmatmul.mubr.msk.bf16.vlgmr.msra.gmra.mxu1 %vm595_vm0, %v3226_v58 }
 0x28e   : > { %v1106_v10 = vpop.f32.mrf.mxu1 }
 0x28f   : > { %v1125_v40 = vmul.f32 %v1118_v26, %v1106_v10  ;;  %v573_v10 = vld [vmem:[%s3123_s14 + $0x8] sm:$0xff] }
 0x290   : > { %v1108_v52 = vpop.f32.mrf.mxu1 }
 0x291   : > { %v2957_v9 = vadd.f32 %v1132_v33, %v1125_v40  ;;  %v1126_v45 = vmul.f32 %v1118_v26, %v1108_v52  ;;  %v572_v40 = vld [vmem:[%s3123_s14] sm:$0xff] }
 0x292   : > { %v1110_v21 = vpop.f32.mrf.mxu1 }
 0x293   : > { %v2959_v29 = vadd.f32 %v1132_v33, %v1126_v45  ;;  %v1127_v1 = vmul.f32 %v1123_v57, %v1110_v21  ;;  %v1143_v2 = vmax.f32 %v2957_v9, 0.0 }
 0x294   : > { %v1112_v30 = vpop.f32.mrf.mxu1 }
 0x295   : > { %v1144_v55 = vmax.f32 %v2959_v29, 0.0  ;;  %v2963_v34 = vadd.f32 %v1137_v62, %v1127_v1  ;;  %v1128_v3 = vmul.f32 %v1123_v57, %v1112_v30 }
 0x297   : > { %v2965_v25 = vadd.f32 %v1137_v62, %v1128_v3  ;;  %v1147_v50 = vadd.f32 %v1144_v55, %v1143_v2  ;;  %v1145_v27 = vmax.f32 %v2963_v34, 0.0 }
 0x299   : > { %v1146_v6 = vmax.f32 %v2965_v25, 0.0  ;;  %1148 = vadd.xlane.f32.xlu0 %v1147_v50 }
 0x29b   : > { %v1150_v56 = vadd.f32 %v1146_v6, %v1145_v27 }
 0x29d   : > { %1151 = vadd.xlane.f32.xlu1 %v1150_v56 }
 0x2cf   : > { %v1521_v46 = vpop.f32.mrf.mxu1 }
 0x2d0   : > { %v1530_v63 = vmul.f32 %v1521_v46, %v1118_v26 }
 0x2d1   : > { %v1523_v54 = vpop.f32.mrf.mxu1 }
 0x2d2   : > { %v2977_v5 = vadd.f32 %v1530_v63, %v1132_v33  ;;  %v1531_v39 = vmul.f32 %v1523_v54, %v1118_v26 }
 0x2d3   : > { %v1525_v24 = vpop.f32.mrf.mxu1 }
 0x2d4   : > { %v2979_v61 = vadd.f32 %v1531_v39, %v1132_v33  ;;  %v1532_v41 = vmul.f32 %v1525_v24, %v1123_v57  ;;  %v1538_v16 = vmax.f32 %v2977_v5, 0.0  ;;  %v3227_v33 = vld [vmem:[#allocation32_spill] sm:$0xff] }
 0x2d5   : > { %v1527_v37 = vpop.f32.mrf.mxu1 }
 0x2d6   : > { %v1539_v15 = vmax.f32 %v2979_v61, 0.0  ;;  %v2983_v36 = vadd.f32 %v1532_v41, %v1137_v62  ;;  %v1533_v13 = vmul.f32 %v1527_v37, %v1123_v57 }
 0x2d8   : > { %v2985_v18 = vadd.f32 %v1533_v13, %v1137_v62  ;;  %v1542_v12 = vadd.f32 %v1539_v15, %v1538_v16  ;;  %v1540_v43 = vmax.f32 %v2983_v36, 0.0 }
 0x2da   : > { %v1541_v60 = vmax.f32 %v2985_v18, 0.0  ;;  %1543 = vadd.xlane.f32.xlu0 %v1542_v12 }
 0x2dc   : > { %v1545_v22 = vadd.f32 %v1541_v60, %v1540_v43 }
 0x2de   : > { %1546 = vadd.xlane.f32.xlu0 %v1545_v22 }
 0x322   : > { %v1149_v0 = vpop.xlane.xlu0 %1148 }
 0x323   : > { %v1153_v35 = vmul.f32 0.00390625, %v1149_v0 }
 0x325   : > { %v1155_v42 = vmul.f32 %v1153_v35, %v568_v19 }
 0x326   : > { %v1152_v17 = vpop.xlane.xlu1 %1151 }
 0x327   : > { %v1154_v49 = vmul.f32 0.00390625, %v1152_v17  ;;  %v1158_v48 = vsel %vm1157_vm9, %v1155_v42, 0.0 }
 0x329   : > { %v1156_v44 = vmul.f32 %v1154_v49, %v569_v31 }
 0x32b   : > { %v1159_v51 = vsel %vm1157_vm9, %v1156_v44, 0.0 }
 0x32c   : > { %v1160_v28 = vadd.f32 %v1159_v51, %v1158_v48 }
 0x32e   : > { %v1161_v11 = vrot.slane %v1160_v28, 4 }
 0x330   : > { %v1162_v4 = vadd.f32 %v1161_v11, %v1160_v28 }
 0x332   : > { %v1163_v8 = vrot.slane %v1162_v4, 2 }
 0x334   : > { %v1164_v14 = vadd.f32 %v1163_v8, %v1162_v4 }
 0x336   : > { %v1165_v47 = vrot.slane %v1164_v14, 1 }
 0x338   : > { %v1166_v7 = vadd.f32 %v1165_v47, %v1164_v14 }
 0x33a   : > { %v1167_v58 = vmul.f32 %v1166_v7, %v570_v32 }
 0x33c   : > { %v1168_v26 = vadd.f32 %v1167_v58, %v571_v38 }
 0x33e   : > { %v1169_v57 = vmax.f32 %v1168_v26, 0.0 }
 0x340   : > { %v1173_v52 = vrot.slane %v1169_v57, %v3227_v33 }
 0x342   : > { %v1175_v45 = vmul.f32 %v1173_v52, %v573_v10  ;;  %v1174_v21 = vmul.f32 %v1173_v52, %v572_v40 }
 0x344   : > { %v1179_v1 = vsel %vm1157_vm9, %v1175_v45, 0.0  ;;  %v1176_v62 = vsel %vm1157_vm9, %v1174_v21, 0.0 }
 0x345   : > { %1180 = vadd.xlane.f32.xlu0 %v1179_v1  ;;  %1177 = vadd.xlane.f32.xlu1 %v1176_v62 }
 0x363   : > { %v1544_v30 = vpop.xlane.xlu0 %1543 }
 0x364   : > { %v1548_v3 = vmul.f32 0.00390625, %v1544_v30 }
 0x366   : > { %v1550_v56 = vmul.f32 %v1548_v3, %v568_v19 }
 0x367   : > { %v1547_v50 = vpop.xlane.xlu0 %1546 }
 0x368   : > { %v1549_v46 = vmul.f32 0.00390625, %v1547_v50  ;;  %v1552_v54 = vsel %vm1157_vm9, %v1550_v56, 0.0 }
 0x36a   : > { %v1551_v63 = vmul.f32 %v1549_v46, %v569_v31 }
 0x36c   : > { %v1553_v39 = vsel %vm1157_vm9, %v1551_v63, 0.0 }
 0x36d   : > { %v1554_v24 = vadd.f32 %v1553_v39, %v1552_v54 }
 0x36f   : > { %v1555_v41 = vrot.slane %v1554_v24, 4 }
 0x371   : > { %v1556_v37 = vadd.f32 %v1555_v41, %v1554_v24 }
 0x373   : > { %v1557_v13 = vrot.slane %v1556_v37, 2 }
 0x375   : > { %v1558_v12 = vadd.f32 %v1557_v13, %v1556_v37 }
 0x377   : > { %v1559_v22 = vrot.slane %v1558_v12, 1 }
 0x379   : > { %v1560_v59 = vadd.f32 %v1559_v22, %v1558_v12 }
 0x37b   : > { %v1561_v53 = vmul.f32 %v1560_v59, %v570_v32 }
 0x37d   : > { %v1562_v23 = vadd.f32 %v1561_v53, %v571_v38 }
 0x37f   : > { %v1563_v20 = vmax.f32 %v1562_v23, 0.0 }
 0x381   : > { %v1567_v0 = vrot.slane %v1563_v20, %v3227_v33 }
 0x383   : > { %v1569_v35 = vmul.f32 %v1567_v0, %v573_v10  ;;  %v1568_v19 = vmul.f32 %v1567_v0, %v572_v40 }
 0x385   : > { %v1573_v31 = vsel %vm1157_vm9, %v1569_v35, 0.0  ;;  %v1570_v17 = vsel %vm1157_vm9, %v1568_v19, 0.0 }
 0x386   : > { %1574 = vadd.xlane.f32.xlu0 %v1573_v31  ;;  %1571 = vadd.xlane.f32.xlu1 %v1570_v17 }
 0x3ce   : > { %v1181_v42 = vpop.xlane.xlu0 %1180  ;;  %v1178_v49 = vpop.xlane.xlu1 %1177 }
 0x3cf   : > { %v1183_v44 = vmul.f32 0.16666667, %v1181_v42  ;;  %v1182_v48 = vmul.f32 0.16666667, %v1178_v49 }
 0x3d1   : > { %v1185_v51 = vadd.f32 0.5, %v1183_v44  ;;  %v1184_v28 = vadd.f32 0.5, %v1182_v48 }
 0x3d3   : > { %v1187_v11 = vmax.f32 %v1185_v51, 0.0  ;;  %v1186_v4 = vmax.f32 %v1184_v28, 0.0 }
 0x3d5   : > { %v1189_v8 = vmin.f32 %v1187_v11, 1.0  ;;  %v1188_v14 = vmin.f32 %v1186_v4, 1.0 }
 0x3d7   : > { %v1192_v47 = vmul.f32 %v1189_v8, %v1145_v27  ;;  %v1193_v32 = vmul.f32 %v1189_v8, %v1146_v6  ;;  %v1190_v7 = vmul.f32 %v1188_v14, %v1143_v2  ;;  %v1191_v38 = vmul.f32 %v1188_v14, %v1144_v55 }
 0x3d9   : > { %v1745_v58 = vpack.c.bf16 %v1193_v32, %v1192_v47  ;;  %v1744_v26 = vpack.c.bf16 %v1191_v38, %v1190_v7 }
 0x3db   : > { %1207 = vst [vmem:[%s3004_s20 + $0x18] sm:$0xff] %v1745_v58  ;;  %1206 = vst [vmem:[%s3004_s20 + $0x10] sm:$0xff] %v1744_v26 }
 0x40f   : > { %v1575_v57 = vpop.xlane.xlu0 %1574  ;;  %v1572_v10 = vpop.xlane.xlu1 %1571 }
 0x410   : > { %v1577_v40 = vmul.f32 0.16666667, %v1575_v57  ;;  %v1576_v34 = vmul.f32 0.16666667, %v1572_v10 }
 0x412   : > { %v1579_v27 = vadd.f32 0.5, %v1577_v40  ;;  %v1578_v25 = vadd.f32 0.5, %v1576_v34 }
 0x414   : > { %v1581_v6 = vmax.f32 %v1579_v27, 0.0  ;;  %v1580_v9 = vmax.f32 %v1578_v25, 0.0 }
 0x416   : > { %v1583_v2 = vmin.f32 %v1581_v6, 1.0  ;;  %v1582_v29 = vmin.f32 %v1580_v9, 1.0 }
 0x418   : > { %v1586_v55 = vmul.f32 %v1583_v2, %v1540_v43  ;;  %v1587_v33 = vmul.f32 %v1583_v2, %v1541_v60  ;;  %v1584_v52 = vmul.f32 %v1582_v29, %v1538_v16  ;;  %v1585_v45 = vmul.f32 %v1582_v29, %v1539_v15 }
 0x41a   : > { %v1747_v36 = vpack.c.bf16 %v1587_v33, %v1586_v55  ;;  %v1746_v43 = vpack.c.bf16 %v1585_v45, %v1584_v52 }
 0x41c   : > { %1736 = vst [vmem:[%s3004_s20 + $0x38] sm:$0xff] %v1747_v36  ;;  %1735 = vst [vmem:[%s3004_s20 + $0x30] sm:$0xff] %v1746_v43 }
 0x41d   : > { %1898 = shalt.err (!%p1895_p3)
}
 0x41e   : > { %s1899_s24 = scalar_lea.hbm %s3061_s27, 1024  ;;  %s1903_s16 = scalar_lea.hbm %s3124_s15, 4096 }
 0x41f   : > { %p1900_p2 = scmp.ne.s32.totalorder %s3061_s27, %s1899_s24  ;;  %p1904_p7 = scmp.lt.s32.totalorder %s3061_s27, %s3124_s15 }
 0x420   : > { %p1905_p6 = scmp.lt.s32.totalorder %s1903_s16, %s1899_s24 }
 0x421   : > { %p1901_p4 = pnand %p1900_p2, %p2089_p5 }
 0x422   : > { %p1906_p9 = por %p1905_p6, %p1904_p7 }
 0x423   : > { %p1902_p13 = pneg %p1901_p4 }
 0x425   : > { %p1907_p10 = pnand %p1906_p9, %p1902_p13 }
 0x427   : > { %1910 = shalt.err (!%p1907_p10)
}
 0x428   : > { %s1969_s18 = smov 128   ;;  %s1970_s17 = smov 8  }
 0x429   : > { %1758 = dma.vmem_to_hbm [thread:$0]  (%p2089_p5), %s3063_s26, 1024, %s3061_s27, %s3069_s22, %s1969_s18, %s1969_s18, %s1970_s17  }
 0x42a PF: > { %s3228_s30 = sld [smem:[#allocation11_spill]]  ;;  %p1775_p12 = scmp.ge.s32.totalorder %s1953_s21, 2 }
 0x42b   : > { %s3229_s20 = sld [smem:[#allocation15_spill]] }
 0x430   : > { %s1632_s23 = sand.u32 1, %s3228_s30  }
 0x431   : > { %p3230_p8 = scmp.ne.s32.totalorder %s3229_s20, 0  ;;  %s1633_s24 = scalar_lea.sflag [#allocation4], %s1632_s23 }
 0x433   : > { %p1768_p11 = pnand %p1775_p12, %p3230_p8 }
 0x435   : > { %p1769_p0 = pneg %p1768_p11 }
 0x437   : > { %1936 = dma.done.wait (%p1769_p0), %s1633_s24, 1024  }
 0x438   : > { %1938 = vsyncadd (%p1769_p0), %s1633_s24, 4294966272  ;;  %s3231_s21 = sld [smem:[#allocation13_spill]]  ;;  %s3234_s18 = smov %s1945_s19 }
 0x439   : > { %s3232_s16 = sld [smem:[#allocation12_spill]] }
 0x43a   : > { %s3233_s20 = sld [smem:[#allocation14_spill]] }
 0x43e   : > { %p27_p1 = scmp.ge.s32.totalorder %s3231_s21, 6  }
 0x43f   : > { %s3235_s19 = smov %s3232_s16 }
 0x440   :  { %29 = sbr.rel (!%p27_p1) target bundleno = 5 (0x5), region = 126 }
 0x445   :  { %1638 = vsyncpa [#allocation3], 1 }
 0x446   :  { %1640 = vsyncpa [#allocation3 + $0x1], 1 }
 0x447   :  { %1641 = vsyncpa [#allocation6], 1 }
 0x448   :  { %1642 = vsyncpa [#allocation4], 1 }
 0x449   :  { %1644 = vsyncpa [#allocation4 + $0x1], 1 }

</bundles_post_ra>
